<compile_context>
chip_gen: v6e
topology: v6e:2x2x1
jax: 0.10.0
libtpu: 0.0.40
codegen_flags: <defaults>
</compile_context>

<pallas_src>
import functools

import jax
import jax.numpy as jnp
from jax.experimental import pallas as pl
from jax.experimental.pallas import tpu as pltpu

LN_EPS = 1e-12          # HF Bert LayerNorm eps
BF16 = jnp.bfloat16
APPROX_RECIPROCAL = True  # set False for strict parity of the softmax denom


# ----------------------------- kernel helpers -------------------------------

def _layer_norm(x, gamma, beta):
    mean = jnp.mean(x, axis=-1, keepdims=True)
    var = jnp.mean(jnp.square(x - mean), axis=-1, keepdims=True)
    return (x - mean) * jax.lax.rsqrt(var + LN_EPS) * gamma + beta


def _gelu(x):
    # exact (erf-based) GELU, matching torch.nn.GELU() / HF "gelu"
    return 0.5 * x * (1.0 + jax.lax.erf(x * (1.0 / jnp.sqrt(2.0).astype(x.dtype))))


def _recip(x):
    if APPROX_RECIPROCAL:
        return pl.reciprocal(x, approx=True)
    return 1.0 / x


def _pick_tile(dim, candidates):
    for c in candidates:
        if c <= dim and dim % c == 0:
            return c
    return dim  # small / odd dims: use the full extent (valid block)


# --------------------------------- kernels ----------------------------------

def _embed_ln_kernel(we_ref, te_ref, pe_ref, g_ref, b_ref, o_ref):
    # pe block is re-used (broadcast) across the batch grid axis.
    s = we_ref[0] + te_ref[0] + pe_ref[...]                  # (S, H) f32
    o_ref[0] = _layer_norm(s, g_ref[...], b_ref[...]).astype(o_ref.dtype)


def _dense_kernel(x_ref, w_ref, b_ref, o_ref, acc_ref, *, activation):
    # tiled matmul: grid = (M/tm, N/tn, K/tk), K is the reduction axis.
    # x_ref / w_ref are bf16; accumulation in f32.
    @pl.when(pl.program_id(2) == 0)
    def _():
        acc_ref[...] = jnp.zeros_like(acc_ref)

    acc_ref[...] += jnp.dot(x_ref[...], w_ref[...],
                            preferred_element_type=jnp.float32)

    @pl.when(pl.program_id(2) == pl.num_programs(2) - 1)
    def _():
        y = acc_ref[...] + b_ref[...]
        if activation == "gelu":
            y = _gelu(y)
        o_ref[...] = y.astype(o_ref.dtype)


def _dense_addln_kernel(x_ref, w_ref, b_ref, r_ref, g_ref, be_ref, o_ref, acc_ref):
    # matmul + bias + residual + LayerNorm fused epilogue (N == H, untiled so
    # the full row is available for the LN reduction). grid = (M/tm, K/tk).
    @pl.when(pl.program_id(1) == 0)
    def _():
        acc_ref[...] = jnp.zeros_like(acc_ref)

    acc_ref[...] += jnp.dot(x_ref[...], w_ref[...],
                            preferred_element_type=jnp.float32)

    @pl.when(pl.program_id(1) == pl.num_programs(1) - 1)
    def _():
        y = acc_ref[...] + b_ref[...] + r_ref[...].astype(jnp.float32)
        o_ref[...] = _layer_norm(y, g_ref[...], be_ref[...]).astype(o_ref.dtype)


def _attention_kernel(q_ref, k_ref, v_ref, m_ref, o_ref, acc_ref, *, n_heads, dh):
    # grid = (B, S//tq). One (tq, H) query block vs the full (S, H) K/V block
    # of the same batch element (K/V block index is constant across q-tiles so
    # it stays resident).  1/sqrt(dh) is already folded into the Q projection.
    bias = m_ref[0]                      # (1, S) additive mask (raw 0/1, as in ref)
    q_all = q_ref[0]                     # (tq, H) bf16
    k_all = k_ref[0]                     # (S,  H) bf16
    v_all = v_ref[0]                     # (S,  H) bf16
    for h in range(n_heads):
        q = q_all[:, h * dh:(h + 1) * dh]
        k = k_all[:, h * dh:(h + 1) * dh]
        v = v_all[:, h * dh:(h + 1) * dh]
        # q @ k^T without materializing a transpose: contract dim 1 vs dim 1.
        s = jax.lax.dot_general(q, k, dimension_numbers=(((1,), (1,)), ((), ())),
                                preferred_element_type=jnp.float32)   # (tq, S)
        s = s + bias
        s = s - jnp.max(s, axis=-1, keepdims=True)
        p = jnp.exp(s)
        inv_l = _recip(jnp.sum(p, axis=-1, keepdims=True))
        ctx = jnp.dot(p.astype(BF16), v, preferred_element_type=jnp.float32)
        acc_ref[:, h * dh:(h + 1) * dh] = ctx * inv_l
    o_ref[0] = acc_ref[...].astype(o_ref.dtype)   # one lane-dense (tq, H) store


def _head_kernel(x_ref, w1_ref, b1_ref, w2_ref, b2_ref, oh_ref, cw_ref,
                 loss_ref, logits_ref, pooled_ref, *, inv_s):
    # grid = (B,): accumulate the mean-pooled row for this batch element, then
    # on the last step run the MLP head and the class-weighted CE loss.
    b = pl.program_id(0)
    pooled_ref[pl.ds(b, 1), :] = (
        jnp.sum(x_ref[0].astype(jnp.float32), axis=0, keepdims=True) * inv_s)

    @pl.when(b == pl.num_programs(0) - 1)
    def _():
        pooled = pooled_ref[...]                                   # (B, H) f32
        h1 = _gelu(jnp.dot(pooled.astype(BF16), w1_ref[...],
                           preferred_element_type=jnp.float32) + b1_ref[...])
        logits = jnp.dot(h1.astype(BF16), w2_ref[...],
                         preferred_element_type=jnp.float32) + b2_ref[...]
        logits_ref[...] = logits
        m = jnp.max(logits, axis=-1, keepdims=True)
        lse = jnp.log(jnp.sum(jnp.exp(logits - m), axis=-1, keepdims=True)) + m
        picked = jnp.sum(oh_ref[...] * logits, axis=-1, keepdims=True)
        nll = lse - picked                                         # (B, 1)
        w = cw_ref[...]                                            # (B, 1)
        loss_ref[...] = jnp.reshape(jnp.sum(w * nll) / jnp.sum(w), (1, 1))


# ------------------------------ kernel wrappers ------------------------------

def embed_layernorm(we, te, pe, gamma, beta, B, S):
    H = we.shape[-1]
    out = pl.pallas_call(
        _embed_ln_kernel,
        out_shape=jax.ShapeDtypeStruct((B, S, H), BF16),
        grid=(B,),
        in_specs=[
            pl.BlockSpec((1, S, H), lambda i: (i, 0, 0)),
            pl.BlockSpec((1, S, H), lambda i: (i, 0, 0)),
            pl.BlockSpec((S, H), lambda i: (0, 0)),   # pe broadcast over batch
            pl.BlockSpec((1, H), lambda i: (0, 0)),
            pl.BlockSpec((1, H), lambda i: (0, 0)),
        ],
        out_specs=pl.BlockSpec((1, S, H), lambda i: (i, 0, 0)),
        compiler_params=pltpu.CompilerParams(dimension_semantics=("parallel",)),
    )(we, te, pe, gamma, beta)
    return out.reshape(B * S, H)


def dense(x, w, b, activation=None, out_dtype=BF16):
    # x: (M, K) bf16, w: (K, N) bf16 (pre-cast), b: (1, N) f32.
    M, K = x.shape
    N = w.shape[1]
    tm = _pick_tile(M, (512, 256, 128, 64, 32, 16))
    tn = _pick_tile(N, (1024, 768, 512, 384, 256, 128))
    tk = _pick_tile(K, (512, 384, 256, 128))
    kernel = functools.partial(_dense_kernel, activation=activation)
    return pl.pallas_call(
        kernel,
        out_shape=jax.ShapeDtypeStruct((M, N), out_dtype),
        grid=(M // tm, N // tn, K // tk),
        in_specs=[
            pl.BlockSpec((tm, tk), lambda i, j, k: (i, k)),
            pl.BlockSpec((tk, tn), lambda i, j, k: (k, j)),
            pl.BlockSpec((1, tn), lambda i, j, k: (0, j)),
        ],
        out_specs=pl.BlockSpec((tm, tn), lambda i, j, k: (i, j)),
        scratch_shapes=[pltpu.VMEM((tm, tn), jnp.float32)],
        compiler_params=pltpu.CompilerParams(
            dimension_semantics=("parallel", "parallel", "arbitrary")),
    )(x, w, b)


def dense_add_layernorm(x, w, b, residual, gamma, beta, out_dtype=BF16):
    # x: (M, K) bf16, w: (K, H) bf16, residual: (M, H) bf16; gamma/beta (1, H) f32.
    M, K = x.shape
    N = w.shape[1]  # == H; kept un-tiled so the LN reduction sees the full row
    tm = _pick_tile(M, (512, 256, 128, 64, 32, 16))
    tk = _pick_tile(K, (512, 384, 256, 128))
    return pl.pallas_call(
        _dense_addln_kernel,
        out_shape=jax.ShapeDtypeStruct((M, N), out_dtype),
        grid=(M // tm, K // tk),
        in_specs=[
            pl.BlockSpec((tm, tk), lambda i, k: (i, k)),
            pl.BlockSpec((tk, N), lambda i, k: (k, 0)),
            pl.BlockSpec((1, N), lambda i, k: (0, 0)),
            pl.BlockSpec((tm, N), lambda i, k: (i, 0)),
            pl.BlockSpec((1, N), lambda i, k: (0, 0)),
            pl.BlockSpec((1, N), lambda i, k: (0, 0)),
        ],
        out_specs=pl.BlockSpec((tm, N), lambda i, k: (i, 0)),
        scratch_shapes=[pltpu.VMEM((tm, N), jnp.float32)],
        compiler_params=pltpu.CompilerParams(
            dimension_semantics=("parallel", "arbitrary")),
    )(x, w, b, residual, gamma, beta)


def attention(qkv_flat, mask_bias, B, S, n_heads, dh):
    H = n_heads * dh
    qkv = qkv_flat.reshape(B, S, 3 * H)
    tq = _pick_tile(S, (256, 128))          # query-block tiling; falls back to S
    kernel = functools.partial(_attention_kernel, n_heads=n_heads, dh=dh)
    out = pl.pallas_call(
        kernel,
        out_shape=jax.ShapeDtypeStruct((B, S, H), BF16),
        grid=(B, S // tq),
        in_specs=[
            pl.BlockSpec((1, tq, H), lambda b, q: (b, q, 0)),   # Q  tile
            pl.BlockSpec((1, S, H), lambda b, q: (b, 0, 1)),    # K  (resident over q)
            pl.BlockSpec((1, S, H), lambda b, q: (b, 0, 2)),    # V  (resident over q)
            pl.BlockSpec((1, 1, S), lambda b, q: (b, 0, 0)),    # additive mask
        ],
        out_specs=pl.BlockSpec((1, tq, H), lambda b, q: (b, q, 0)),
        scratch_shapes=[pltpu.VMEM((tq, H), jnp.float32)],
        compiler_params=pltpu.CompilerParams(
            dimension_semantics=("parallel", "parallel")),
    )(qkv, qkv, qkv, mask_bias)
    return out.reshape(B * S, H)


def head_mlp_loss(seq_out, w1, b1, w2, b2, labels, class_weights):
    # seq_out: (B, S, H) bf16.  Fused mean-pool -> MLPHead -> weighted CE.
    B, S, H = seq_out.shape
    M1 = w1.shape[1]
    C = w2.shape[1]
    onehot = jax.nn.one_hot(labels, C, dtype=jnp.float32)
    cw = class_weights[labels].reshape(B, 1).astype(jnp.float32)
    kernel = functools.partial(_head_kernel, inv_s=1.0 / S)
    loss, logits = pl.pallas_call(
        kernel,
        out_shape=(jax.ShapeDtypeStruct((1, 1), jnp.float32),
                   jax.ShapeDtypeStruct((B, C), jnp.float32)),
        grid=(B,),
        in_specs=[
            pl.BlockSpec((1, S, H), lambda b: (b, 0, 0)),
            pl.BlockSpec((H, M1), lambda b: (0, 0)),
            pl.BlockSpec((1, M1), lambda b: (0, 0)),
            pl.BlockSpec((M1, C), lambda b: (0, 0)),
            pl.BlockSpec((1, C), lambda b: (0, 0)),
            pl.BlockSpec((B, C), lambda b: (0, 0)),
            pl.BlockSpec((B, 1), lambda b: (0, 0)),
        ],
        out_specs=(pl.BlockSpec((1, 1), lambda b: (0, 0)),
                   pl.BlockSpec((B, C), lambda b: (0, 0))),
        scratch_shapes=[pltpu.VMEM((B, H), jnp.float32)],
        compiler_params=pltpu.CompilerParams(dimension_semantics=("arbitrary",)),
    )(seq_out, w1, b1, w2, b2, onehot, cw)
    return loss[0, 0], logits


# ------------------------------ model definition -----------------------------

def init_params(key, *, vocab, max_pos, n_type, hidden, n_layers, n_heads,
                inter, mlp_hidden, num_labels):
    n_keys = 3 + 2 + 6 * n_layers + 4
    keys = iter(jax.random.split(key, n_keys))

    def nrm(shape):
        # matches _init_weights: normal(mean=0, std=0.02); biases zero; LN default
        return 0.02 * jax.random.normal(next(keys), shape, jnp.float32)

    zeros = lambda n: jnp.zeros((n,), jnp.float32)
    ones = lambda n: jnp.ones((n,), jnp.float32)

    p = {
        "word_emb": nrm((vocab, hidden)),
        "pos_emb": nrm((max_pos, hidden)),
        "type_emb": nrm((n_type, hidden)),
        "emb_ln_g": ones(hidden), "emb_ln_b": zeros(hidden),
        "mlp_w1": nrm((hidden, mlp_hidden)), "mlp_b1": zeros(mlp_hidden),
        "mlp_w2": nrm((mlp_hidden, num_labels)), "mlp_b2": zeros(num_labels),
        "layers": [],
    }
    for _ in range(n_layers):
        p["layers"].append({
            "wq": nrm((hidden, hidden)), "bq": zeros(hidden),
            "wk": nrm((hidden, hidden)), "bk": zeros(hidden),
            "wv": nrm((hidden, hidden)), "bv": zeros(hidden),
            "wo": nrm((hidden, hidden)), "bo": zeros(hidden),
            "ln1_g": ones(hidden), "ln1_b": zeros(hidden),
            "wi": nrm((hidden, inter)), "bi": zeros(inter),
            "wo2": nrm((inter, hidden)), "bo2": zeros(hidden),
            "ln2_g": ones(hidden), "ln2_b": zeros(hidden),
        })
    return p


def prepare_params(params, n_heads):
    """One-time parameter prep: bf16 weight casts, fused (scaled) QKV, (1,N) biases."""
    H = params["word_emb"].shape[1]
    dh = H // n_heads
    scale = 1.0 / float(dh) ** 0.5
    r = lambda v: v.reshape(1, -1).astype(jnp.float32)
    prepped = {
        "word_emb": params["word_emb"],
        "type_emb": params["type_emb"],
        "pos_emb": params["pos_emb"],
        "emb_ln_g": r(params["emb_ln_g"]), "emb_ln_b": r(params["emb_ln_b"]),
        "mlp_w1": params["mlp_w1"].astype(BF16), "mlp_b1": r(params["mlp_b1"]),
        "mlp_w2": params["mlp_w2"].astype(BF16), "mlp_b2": r(params["mlp_b2"]),
        "layers": [],
    }
    for lp in params["layers"]:
        wqkv = jnp.concatenate([lp["wq"] * scale, lp["wk"], lp["wv"]], axis=1).astype(BF16)
        bqkv = jnp.concatenate([lp["bq"] * scale, lp["bk"], lp["bv"]]).reshape(1, -1)
        prepped["layers"].append({
            "wqkv": wqkv, "bqkv": bqkv.astype(jnp.float32),
            "wo": lp["wo"].astype(BF16), "bo": r(lp["bo"]),
            "ln1_g": r(lp["ln1_g"]), "ln1_b": r(lp["ln1_b"]),
            "wi": lp["wi"].astype(BF16), "bi": r(lp["bi"]),
            "wo2": lp["wo2"].astype(BF16), "bo2": r(lp["bo2"]),
            "ln2_g": r(lp["ln2_g"]), "ln2_b": r(lp["ln2_b"]),
        })
    return prepped


def scibert_forward(prepped, input_ids, attention_mask, input_type_ids, labels,
                    class_weights, *, n_heads):
    B, S = input_ids.shape
    H = prepped["word_emb"].shape[1]
    dh = H // n_heads

    # Embedding table gathers are glue (plain JAX); sum + LayerNorm is in Pallas.
    we = jnp.take(prepped["word_emb"], input_ids.reshape(-1), axis=0).reshape(B, S, H)
    te = jnp.take(prepped["type_emb"], input_type_ids.reshape(-1), axis=0).reshape(B, S, H)
    pe = prepped["pos_emb"][:S]                              # (S, H) — broadcast in-kernel
    x = embed_layernorm(we, te, pe, prepped["emb_ln_g"], prepped["emb_ln_b"], B, S)
    # TODO(synk): dropout layers (p=0.1) are identity in eval mode; no RNG applied.

    # Reference adds attention_mask[:, None, None, :] (raw 0/1) to the scores.
    mask_bias = attention_mask.astype(jnp.float32).reshape(B, 1, S)

    for lp in prepped["layers"]:
        qkv = dense(x, lp["wqkv"], lp["bqkv"])                          # (B*S, 3H) bf16
        ctx = attention(qkv, mask_bias, B, S, n_heads, dh)              # (B*S, H)  bf16
        x1 = dense_add_layernorm(ctx, lp["wo"], lp["bo"], x,
                                 lp["ln1_g"], lp["ln1_b"])              # attn out + LN
        inter = dense(x1, lp["wi"], lp["bi"], activation="gelu")        # (B*S, I)  bf16
        x = dense_add_layernorm(inter, lp["wo2"], lp["bo2"], x1,
                                lp["ln2_g"], lp["ln2_b"])               # ffn out + LN

    sequence_output = x.reshape(B, S, H)

    # labels path: fused mean pool -> MLPHead (num_MLP_layers=2) -> weighted CE
    loss, logits = head_mlp_loss(sequence_output, prepped["mlp_w1"], prepped["mlp_b1"],
                                 prepped["mlp_w2"], prepped["mlp_b2"],
                                 labels, class_weights)
    return loss, logits, sequence_output


# ----------------------------------- main ------------------------------------

if __name__ == "__main__":
    # small shapes consistent with the module (hidden shrunk from 768 -> 128)
    B, S, H = 2, 8, 128
    n_heads, n_layers, inter = 2, 2, 256
    vocab, max_pos, n_type = 100, 32, 3
    mlp_hidden, num_labels = 32, 4

    key = jax.random.PRNGKey(0)
    kp, kid, ktid, klab = jax.random.split(key, 4)

    params = init_params(
        kp, vocab=vocab, max_pos=max_pos, n_type=n_type, hidden=H,
        n_layers=n_layers, n_heads=n_heads, inter=inter,
        mlp_hidden=mlp_hidden, num_labels=num_labels)
    prepped = prepare_params(params, n_heads)   # one-time bf16 cast / QKV fusion

    input_ids = jax.random.randint(kid, (B, S), 0, vocab, dtype=jnp.int32)
    input_type_ids = jax.random.randint(ktid, (B, S), 0, n_type, dtype=jnp.int32)
    attention_mask = jnp.concatenate(
        [jnp.ones((B, S - 2), jnp.int32), jnp.zeros((B, 2), jnp.int32)], axis=1)
    labels = jax.random.randint(klab, (B,), 0, num_labels, dtype=jnp.int32)
    class_weights = jnp.array([1.0, 2.0, 0.5, 1.5], jnp.float32)

    fwd = jax.jit(functools.partial(scibert_forward, n_heads=n_heads))
    loss, logits, seq_out = fwd(prepped, input_ids, attention_mask,
                                input_type_ids, labels, class_weights)
    jax.block_until_ready((loss, logits, seq_out))
    print("KERNEL_OK")
</pallas_src>

<mosaic_0001>
module attributes {stable_mosaic.version = 11 : i64} {
  func.func @_attention_kernel(%arg0: i32, %arg1: i32, %arg2: memref<1x8x128xbf16, #tpu.memory_space<vmem>>, %arg3: memref<1x8x128xbf16, #tpu.memory_space<vmem>>, %arg4: memref<1x8x128xbf16, #tpu.memory_space<vmem>>, %arg5: memref<1x1x8xf32, #tpu.memory_space<vmem>>, %arg6: memref<1x8x128xbf16, #tpu.memory_space<vmem>>, %arg7: memref<8x128xf32, #tpu.memory_space<vmem>>) attributes {dimension_semantics = [#tpu.dimension_semantics<parallel>, #tpu.dimension_semantics<parallel>], iteration_bounds = array<i64: 2, 1>, scalar_prefetch = 0 : i64, scratch_operands = 1 : i64, tpu.core_type = #tpu.core_type<tc>, window_params = [{transform_indices = @transform_0, window_bounds = array<i64: 1, 8, 128>}, {transform_indices = @transform_1, window_bounds = array<i64: 1, 8, 128>}, {transform_indices = @transform_2, window_bounds = array<i64: 1, 8, 128>}, {transform_indices = @transform_3, window_bounds = array<i64: 1, 1, 8>}, {transform_indices = @transform_4, window_bounds = array<i64: 1, 8, 128>}]} {
    %c0 = arith.constant 0 : index
    %c0_0 = arith.constant 0 : index
    %c0_1 = arith.constant 0 : index
    %0 = vector.load %arg5[%c0, %c0_0, %c0_1] : memref<1x1x8xf32, #tpu.memory_space<vmem>>, vector<1x1x8xf32>
    %1 = vector.shape_cast %0 : vector<1x1x8xf32> to vector<1x8xf32>
    %c0_2 = arith.constant 0 : index
    %c0_3 = arith.constant 0 : index
    %c0_4 = arith.constant 0 : index
    %2 = vector.load %arg2[%c0_2, %c0_3, %c0_4] : memref<1x8x128xbf16, #tpu.memory_space<vmem>>, vector<1x8x128xbf16>
    %3 = vector.shape_cast %2 : vector<1x8x128xbf16> to vector<8x128xbf16>
    %c0_5 = arith.constant 0 : index
    %c0_6 = arith.constant 0 : index
    %c0_7 = arith.constant 0 : index
    %4 = vector.load %arg3[%c0_5, %c0_6, %c0_7] : memref<1x8x128xbf16, #tpu.memory_space<vmem>>, vector<1x8x128xbf16>
    %5 = vector.shape_cast %4 : vector<1x8x128xbf16> to vector<8x128xbf16>
    %c0_8 = arith.constant 0 : index
    %c0_9 = arith.constant 0 : index
    %c0_10 = arith.constant 0 : index
    %6 = vector.load %arg4[%c0_8, %c0_9, %c0_10] : memref<1x8x128xbf16, #tpu.memory_space<vmem>>, vector<1x8x128xbf16>
    %7 = vector.shape_cast %6 : vector<1x8x128xbf16> to vector<8x128xbf16>
    %8 = vector.extract_strided_slice %3 {offsets = [0, 0], sizes = [8, 64], strides = [1, 1]} : vector<8x128xbf16> to vector<8x64xbf16>
    %9 = vector.extract_strided_slice %5 {offsets = [0, 0], sizes = [8, 64], strides = [1, 1]} : vector<8x128xbf16> to vector<8x64xbf16>
    %10 = vector.extract_strided_slice %7 {offsets = [0, 0], sizes = [8, 64], strides = [1, 1]} : vector<8x128xbf16> to vector<8x64xbf16>
    %cst = arith.constant dense<0.000000e+00> : vector<8x8xf32>
    %11 = tpu.matmul %8, %9, %cst {dimension_numbers = #tpu.dot_dimension_numbers<[1], [1], [0], [0], [0, 0, 1, 0], [], []>} : vector<8x64xbf16>, vector<8x64xbf16>, vector<8x8xf32> -> vector<8x8xf32>
    %12 = vector.broadcast %1 : vector<1x8xf32> to vector<8x8xf32>
    %13 = arith.addf %11, %12 : vector<8x8xf32>
    %cst_11 = arith.constant dense<0xFF800000> : vector<8xf32>
    %14 = vector.multi_reduction <maximumf>, %13, %cst_11 [1] : vector<8x8xf32> to vector<8xf32>
    %15 = vector.shape_cast %14 : vector<8xf32> to vector<8x1xf32>
    %16 = vector.broadcast %15 : vector<8x1xf32> to vector<8x8xf32>
    %17 = arith.subf %13, %16 : vector<8x8xf32>
    %18 = math.exp %17 : vector<8x8xf32>
    %cst_12 = arith.constant dense<0.000000e+00> : vector<8xf32>
    %19 = vector.multi_reduction <add>, %18, %cst_12 [1] : vector<8x8xf32> to vector<8xf32>
    %20 = vector.shape_cast %19 : vector<8xf32> to vector<8x1xf32>
    %21 = tpu.reciprocal %20 {approx = true} : vector<8x1xf32> -> vector<8x1xf32>
    %22 = arith.truncf %18 : vector<8x8xf32> to vector<8x8xbf16>
    %cst_13 = arith.constant dense<0.000000e+00> : vector<8x64xf32>
    %23 = tpu.matmul %22, %10, %cst_13 {dimension_numbers = #tpu.dot_dimension_numbers<[1], [0], [0], [1], [0, 0, 1, 1], [], []>} : vector<8x8xbf16>, vector<8x64xbf16>, vector<8x64xf32> -> vector<8x64xf32>
    %24 = vector.broadcast %21 : vector<8x1xf32> to vector<8x64xf32>
    %25 = arith.mulf %23, %24 : vector<8x64xf32>
    %c0_14 = arith.constant 0 : index
    %c0_15 = arith.constant 0 : index
    %26 = vector.load %arg7[%c0_14, %c0_15] : memref<8x128xf32, #tpu.memory_space<vmem>>, vector<8x64xf32>
    tpu.vector_store %arg7[%c0_14, %c0_15], %25 {strides = array<i32>} : memref<8x128xf32, #tpu.memory_space<vmem>>, vector<8x64xf32>,
    %27 = vector.extract_strided_slice %3 {offsets = [0, 64], sizes = [8, 64], strides = [1, 1]} : vector<8x128xbf16> to vector<8x64xbf16>
    %28 = vector.extract_strided_slice %5 {offsets = [0, 64], sizes = [8, 64], strides = [1, 1]} : vector<8x128xbf16> to vector<8x64xbf16>
    %29 = vector.extract_strided_slice %7 {offsets = [0, 64], sizes = [8, 64], strides = [1, 1]} : vector<8x128xbf16> to vector<8x64xbf16>
    %cst_16 = arith.constant dense<0.000000e+00> : vector<8x8xf32>
    %30 = tpu.matmul %27, %28, %cst_16 {dimension_numbers = #tpu.dot_dimension_numbers<[1], [1], [0], [0], [0, 0, 1, 0], [], []>} : vector<8x64xbf16>, vector<8x64xbf16>, vector<8x8xf32> -> vector<8x8xf32>
    %31 = vector.broadcast %1 : vector<1x8xf32> to vector<8x8xf32>
    %32 = arith.addf %30, %31 : vector<8x8xf32>
    %cst_17 = arith.constant dense<0xFF800000> : vector<8xf32>
    %33 = vector.multi_reduction <maximumf>, %32, %cst_17 [1] : vector<8x8xf32> to vector<8xf32>
    %34 = vector.shape_cast %33 : vector<8xf32> to vector<8x1xf32>
    %35 = vector.broadcast %34 : vector<8x1xf32> to vector<8x8xf32>
    %36 = arith.subf %32, %35 : vector<8x8xf32>
    %37 = math.exp %36 : vector<8x8xf32>
    %cst_18 = arith.constant dense<0.000000e+00> : vector<8xf32>
    %38 = vector.multi_reduction <add>, %37, %cst_18 [1] : vector<8x8xf32> to vector<8xf32>
    %39 = vector.shape_cast %38 : vector<8xf32> to vector<8x1xf32>
    %40 = tpu.reciprocal %39 {approx = true} : vector<8x1xf32> -> vector<8x1xf32>
    %41 = arith.truncf %37 : vector<8x8xf32> to vector<8x8xbf16>
    %cst_19 = arith.constant dense<0.000000e+00> : vector<8x64xf32>
    %42 = tpu.matmul %41, %29, %cst_19 {dimension_numbers = #tpu.dot_dimension_numbers<[1], [0], [0], [1], [0, 0, 1, 1], [], []>} : vector<8x8xbf16>, vector<8x64xbf16>, vector<8x64xf32> -> vector<8x64xf32>
    %43 = vector.broadcast %40 : vector<8x1xf32> to vector<8x64xf32>
    %44 = arith.mulf %42, %43 : vector<8x64xf32>
    %c0_20 = arith.constant 0 : index
    %c64 = arith.constant 64 : index
    %45 = vector.load %arg7[%c0_20, %c64] : memref<8x128xf32, #tpu.memory_space<vmem>>, vector<8x64xf32>
    tpu.vector_store %arg7[%c0_20, %c64], %44 {strides = array<i32>} : memref<8x128xf32, #tpu.memory_space<vmem>>, vector<8x64xf32>,
    %c0_21 = arith.constant 0 : index
    %c0_22 = arith.constant 0 : index
    %46 = vector.load %arg7[%c0_21, %c0_22] : memref<8x128xf32, #tpu.memory_space<vmem>>, vector<8x128xf32>
    %47 = arith.truncf %46 : vector<8x128xf32> to vector<8x128xbf16>
    %c0_23 = arith.constant 0 : index
    %c0_24 = arith.constant 0 : index
    %c0_25 = arith.constant 0 : index
    %48 = vector.load %arg6[%c0_23, %c0_24, %c0_25] : memref<1x8x128xbf16, #tpu.memory_space<vmem>>, vector<1x8x128xbf16>
    %49 = vector.shape_cast %48 : vector<1x8x128xbf16> to vector<8x128xbf16>
    %50 = vector.shape_cast %47 : vector<8x128xbf16> to vector<1x8x128xbf16>
    tpu.vector_store %arg6[%c0_23, %c0_24, %c0_25], %50 {strides = array<i32>} : memref<1x8x128xbf16, #tpu.memory_space<vmem>>, vector<1x8x128xbf16>,
    return
  }
  func.func @transform_0(%arg0: i32, %arg1: i32) -> (i32, i32, i32) {
    %c0_i32 = arith.constant 0 : i32
    %c0_i32_0 = arith.constant 0 : i32
    return %arg0, %arg1, %c0_i32 : i32, i32, i32
  }
  func.func @transform_1(%arg0: i32, %arg1: i32) -> (i32, i32, i32) {
    %c0_i32 = arith.constant 0 : i32
    %c1_i32 = arith.constant 1 : i32
    %c0_i32_0 = arith.constant 0 : i32
    return %arg0, %c0_i32, %c1_i32 : i32, i32, i32
  }
  func.func @transform_2(%arg0: i32, %arg1: i32) -> (i32, i32, i32) {
    %c0_i32 = arith.constant 0 : i32
    %c2_i32 = arith.constant 2 : i32
    %c0_i32_0 = arith.constant 0 : i32
    return %arg0, %c0_i32, %c2_i32 : i32, i32, i32
  }
  func.func @transform_3(%arg0: i32, %arg1: i32) -> (i32, i32, i32) {
    %c0_i32 = arith.constant 0 : i32
    %c0_i32_0 = arith.constant 0 : i32
    %c0_i32_1 = arith.constant 0 : i32
    return %arg0, %c0_i32, %c0_i32_0 : i32, i32, i32
  }
  func.func @transform_4(%arg0: i32, %arg1: i32) -> (i32, i32, i32) {
    %c0_i32 = arith.constant 0 : i32
    %c0_i32_0 = arith.constant 0 : i32
    return %arg0, %arg1, %c0_i32 : i32, i32, i32
  }
}

module attributes {stable_mosaic.version = 11 : i64} {
  func.func @_embed_ln_kernel(%arg0: i32, %arg1: memref<1x8x128xf32, #tpu.memory_space<vmem>>, %arg2: memref<1x8x128xf32, #tpu.memory_space<vmem>>, %arg3: memref<8x128xf32, #tpu.memory_space<vmem>>, %arg4: memref<1x128xf32, #tpu.memory_space<vmem>>, %arg5: memref<1x128xf32, #tpu.memory_space<vmem>>, %arg6: memref<1x8x128xbf16, #tpu.memory_space<vmem>>) attributes {dimension_semantics = [#tpu.dimension_semantics<parallel>], iteration_bounds = array<i64: 2>, scalar_prefetch = 0 : i64, scratch_operands = 0 : i64, tpu.core_type = #tpu.core_type<tc>, window_params = [{transform_indices = @transform_0, window_bounds = array<i64: 1, 8, 128>}, {transform_indices = @transform_1, window_bounds = array<i64: 1, 8, 128>}, {pipeline_mode = #tpu.pipeline_mode<synchronous>, transform_indices = @transform_2, window_bounds = array<i64: 8, 128>}, {pipeline_mode = #tpu.pipeline_mode<synchronous>, transform_indices = @transform_3, window_bounds = array<i64: 1, 128>}, {pipeline_mode = #tpu.pipeline_mode<synchronous>, transform_indices = @transform_4, window_bounds = array<i64: 1, 128>}, {transform_indices = @transform_5, window_bounds = array<i64: 1, 8, 128>}]} {
    %c0 = arith.constant 0 : index
    %c0_0 = arith.constant 0 : index
    %c0_1 = arith.constant 0 : index
    %0 = vector.load %arg1[%c0, %c0_0, %c0_1] : memref<1x8x128xf32, #tpu.memory_space<vmem>>, vector<1x8x128xf32>
    %1 = vector.shape_cast %0 : vector<1x8x128xf32> to vector<8x128xf32>
    %c0_2 = arith.constant 0 : index
    %c0_3 = arith.constant 0 : index
    %c0_4 = arith.constant 0 : index
    %2 = vector.load %arg2[%c0_2, %c0_3, %c0_4] : memref<1x8x128xf32, #tpu.memory_space<vmem>>, vector<1x8x128xf32>
    %3 = vector.shape_cast %2 : vector<1x8x128xf32> to vector<8x128xf32>
    %4 = arith.addf %1, %3 : vector<8x128xf32>
    %c0_5 = arith.constant 0 : index
    %c0_6 = arith.constant 0 : index
    %5 = vector.load %arg3[%c0_5, %c0_6] : memref<8x128xf32, #tpu.memory_space<vmem>>, vector<8x128xf32>
    %6 = arith.addf %4, %5 : vector<8x128xf32>
    %c0_7 = arith.constant 0 : index
    %c0_8 = arith.constant 0 : index
    %7 = vector.load %arg4[%c0_7, %c0_8] : memref<1x128xf32, #tpu.memory_space<vmem>>, vector<1x128xf32>
    %c0_9 = arith.constant 0 : index
    %c0_10 = arith.constant 0 : index
    %8 = vector.load %arg5[%c0_9, %c0_10] : memref<1x128xf32, #tpu.memory_space<vmem>>, vector<1x128xf32>
    %cst = arith.constant dense<0.000000e+00> : vector<8xf32>
    %9 = vector.multi_reduction <add>, %6, %cst [1] : vector<8x128xf32> to vector<8xf32>
    %10 = vector.shape_cast %9 : vector<8xf32> to vector<8x1xf32>
    %cst_11 = arith.constant 1.280000e+02 : f32
    %11 = vector.broadcast %cst_11 : f32 to vector<8x1xf32>
    %12 = arith.divf %10, %11 : vector<8x1xf32>
    %13 = vector.broadcast %12 : vector<8x1xf32> to vector<8x128xf32>
    %14 = arith.subf %6, %13 : vector<8x128xf32>
    %15 = arith.mulf %14, %14 : vector<8x128xf32>
    %cst_12 = arith.constant dense<0.000000e+00> : vector<8xf32>
    %16 = vector.multi_reduction <add>, %15, %cst_12 [1] : vector<8x128xf32> to vector<8xf32>
    %17 = vector.shape_cast %16 : vector<8xf32> to vector<8x1xf32>
    %cst_13 = arith.constant 1.280000e+02 : f32
    %18 = vector.broadcast %cst_13 : f32 to vector<8x1xf32>
    %19 = arith.divf %17, %18 : vector<8x1xf32>
    %20 = vector.broadcast %12 : vector<8x1xf32> to vector<8x128xf32>
    %21 = arith.subf %6, %20 : vector<8x128xf32>
    %cst_14 = arith.constant 9.99999996E-13 : f32
    %22 = vector.broadcast %cst_14 : f32 to vector<8x1xf32>
    %23 = arith.addf %19, %22 : vector<8x1xf32>
    %24 = math.rsqrt %23 : vector<8x1xf32>
    %25 = vector.broadcast %24 : vector<8x1xf32> to vector<8x128xf32>
    %26 = arith.mulf %21, %25 : vector<8x128xf32>
    %27 = vector.broadcast %7 : vector<1x128xf32> to vector<8x128xf32>
    %28 = arith.mulf %26, %27 : vector<8x128xf32>
    %29 = vector.broadcast %8 : vector<1x128xf32> to vector<8x128xf32>
    %30 = arith.addf %28, %29 : vector<8x128xf32>
    %31 = arith.truncf %30 : vector<8x128xf32> to vector<8x128xbf16>
    %c0_15 = arith.constant 0 : index
    %c0_16 = arith.constant 0 : index
    %c0_17 = arith.constant 0 : index
    %32 = vector.load %arg6[%c0_15, %c0_16, %c0_17] : memref<1x8x128xbf16, #tpu.memory_space<vmem>>, vector<1x8x128xbf16>
    %33 = vector.shape_cast %32 : vector<1x8x128xbf16> to vector<8x128xbf16>
    %34 = vector.shape_cast %31 : vector<8x128xbf16> to vector<1x8x128xbf16>
    tpu.vector_store %arg6[%c0_15, %c0_16, %c0_17], %34 {strides = array<i32>} : memref<1x8x128xbf16, #tpu.memory_space<vmem>>, vector<1x8x128xbf16>,
    return
  }
  func.func @transform_0(%arg0: i32) -> (i32, i32, i32) {
    %c0_i32 = arith.constant 0 : i32
    %c0_i32_0 = arith.constant 0 : i32
    %c0_i32_1 = arith.constant 0 : i32
    return %arg0, %c0_i32, %c0_i32_0 : i32, i32, i32
  }
  func.func @transform_1(%arg0: i32) -> (i32, i32, i32) {
    %c0_i32 = arith.constant 0 : i32
    %c0_i32_0 = arith.constant 0 : i32
    %c0_i32_1 = arith.constant 0 : i32
    return %arg0, %c0_i32, %c0_i32_0 : i32, i32, i32
  }
  func.func @transform_2(%arg0: i32) -> (i32, i32) {
    %c0_i32 = arith.constant 0 : i32
    %c0_i32_0 = arith.constant 0 : i32
    %c0_i32_1 = arith.constant 0 : i32
    return %c0_i32, %c0_i32_0 : i32, i32
  }
  func.func @transform_3(%arg0: i32) -> (i32, i32) {
    %c0_i32 = arith.constant 0 : i32
    %c0_i32_0 = arith.constant 0 : i32
    %c0_i32_1 = arith.constant 0 : i32
    return %c0_i32, %c0_i32_0 : i32, i32
  }
  func.func @transform_4(%arg0: i32) -> (i32, i32) {
    %c0_i32 = arith.constant 0 : i32
    %c0_i32_0 = arith.constant 0 : i32
    %c0_i32_1 = arith.constant 0 : i32
    return %c0_i32, %c0_i32_0 : i32, i32
  }
  func.func @transform_5(%arg0: i32) -> (i32, i32, i32) {
    %c0_i32 = arith.constant 0 : i32
    %c0_i32_0 = arith.constant 0 : i32
    %c0_i32_1 = arith.constant 0 : i32
    return %arg0, %c0_i32, %c0_i32_0 : i32, i32, i32
  }
}

module attributes {stable_mosaic.version = 11 : i64} {
  func.func @_dense_kernel(%arg0: i32, %arg1: i32, %arg2: i32, %arg3: memref<16x128xbf16, #tpu.memory_space<vmem>>, %arg4: memref<128x384xbf16, #tpu.memory_space<vmem>>, %arg5: memref<1x384xf32, #tpu.memory_space<vmem>>, %arg6: memref<16x384xbf16, #tpu.memory_space<vmem>>, %arg7: memref<16x384xf32, #tpu.memory_space<vmem>>) attributes {dimension_semantics = [#tpu.dimension_semantics<parallel>, #tpu.dimension_semantics<parallel>, #tpu.dimension_semantics<arbitrary>], iteration_bounds = array<i64: 1, 1, 1>, scalar_prefetch = 0 : i64, scratch_operands = 1 : i64, tpu.core_type = #tpu.core_type<tc>, window_params = [{transform_indices = @transform_0, window_bounds = array<i64: 16, 128>}, {transform_indices = @transform_1, window_bounds = array<i64: 128, 384>}, {transform_indices = @transform_2, window_bounds = array<i64: 1, 384>}, {transform_indices = @transform_3, window_bounds = array<i64: 16, 384>}]} {
    %c0_i32 = arith.constant 0 : i32
    %0 = arith.cmpi eq, %arg2, %c0_i32 : i32
    %1 = arith.extui %0 : i1 to i32
    %c0_i32_0 = arith.constant 0 : i32
    %2 = arith.cmpi ne, %1, %c0_i32_0 : i32
    scf.if %2 {
      %cst_10 = arith.constant 0.000000e+00 : f32
      %12 = vector.broadcast %cst_10 : f32 to vector<16x384xf32>
      %c0_11 = arith.constant 0 : index
      %c0_12 = arith.constant 0 : index
      %13 = vector.load %arg7[%c0_11, %c0_12] : memref<16x384xf32, #tpu.memory_space<vmem>>, vector<16x384xf32>
      tpu.vector_store %arg7[%c0_11, %c0_12], %12 {strides = array<i32>} : memref<16x384xf32, #tpu.memory_space<vmem>>, vector<16x384xf32>,
    } else {
    }
    %c0 = arith.constant 0 : index
    %c0_1 = arith.constant 0 : index
    %3 = vector.load %arg7[%c0, %c0_1] : memref<16x384xf32, #tpu.memory_space<vmem>>, vector<16x384xf32>
    %c0_2 = arith.constant 0 : index
    %c0_3 = arith.constant 0 : index
    %4 = vector.load %arg3[%c0_2, %c0_3] : memref<16x128xbf16, #tpu.memory_space<vmem>>, vector<16x128xbf16>
    %c0_4 = arith.constant 0 : index
    %c0_5 = arith.constant 0 : index
    %5 = vector.load %arg4[%c0_4, %c0_5] : memref<128x384xbf16, #tpu.memory_space<vmem>>, vector<128x384xbf16>
    %cst = arith.constant dense<0.000000e+00> : vector<16x384xf32>
    %6 = tpu.matmul %4, %5, %cst {dimension_numbers = #tpu.dot_dimension_numbers<[1], [0], [0], [1], [0, 0, 1, 1], [], []>} : vector<16x128xbf16>, vector<128x384xbf16>, vector<16x384xf32> -> vector<16x384xf32>
    %7 = arith.addf %3, %6 : vector<16x384xf32>
    %c0_6 = arith.constant 0 : index
    %c0_7 = arith.constant 0 : index
    %8 = vector.load %arg7[%c0_6, %c0_7] : memref<16x384xf32, #tpu.memory_space<vmem>>, vector<16x384xf32>
    tpu.vector_store %arg7[%c0_6, %c0_7], %7 {strides = array<i32>} : memref<16x384xf32, #tpu.memory_space<vmem>>, vector<16x384xf32>,
    %c0_i32_8 = arith.constant 0 : i32
    %9 = arith.cmpi eq, %arg2, %c0_i32_8 : i32
    %10 = arith.extui %9 : i1 to i32
    %c0_i32_9 = arith.constant 0 : i32
    %11 = arith.cmpi ne, %10, %c0_i32_9 : i32
    scf.if %11 {
      %c0_10 = arith.constant 0 : index
      %c0_11 = arith.constant 0 : index
      %12 = vector.load %arg7[%c0_10, %c0_11] : memref<16x384xf32, #tpu.memory_space<vmem>>, vector<16x384xf32>
      %c0_12 = arith.constant 0 : index
      %c0_13 = arith.constant 0 : index
      %13 = vector.load %arg5[%c0_12, %c0_13] : memref<1x384xf32, #tpu.memory_space<vmem>>, vector<1x384xf32>
      %14 = vector.broadcast %13 : vector<1x384xf32> to vector<16x384xf32>
      %15 = arith.addf %12, %14 : vector<16x384xf32>
      %16 = arith.truncf %15 : vector<16x384xf32> to vector<16x384xbf16>
      %c0_14 = arith.constant 0 : index
      %c0_15 = arith.constant 0 : index
      %17 = vector.load %arg6[%c0_14, %c0_15] : memref<16x384xbf16, #tpu.memory_space<vmem>>, vector<16x384xbf16>
      tpu.vector_store %arg6[%c0_14, %c0_15], %16 {strides = array<i32>} : memref<16x384xbf16, #tpu.memory_space<vmem>>, vector<16x384xbf16>,
    } else {
    }
    return
  }
  func.func @transform_0(%arg0: i32, %arg1: i32, %arg2: i32) -> (i32, i32) {
    %c0_i32 = arith.constant 0 : i32
    return %arg0, %arg2 : i32, i32
  }
  func.func @transform_1(%arg0: i32, %arg1: i32, %arg2: i32) -> (i32, i32) {
    %c0_i32 = arith.constant 0 : i32
    return %arg2, %arg1 : i32, i32
  }
  func.func @transform_2(%arg0: i32, %arg1: i32, %arg2: i32) -> (i32, i32) {
    %c0_i32 = arith.constant 0 : i32
    %c0_i32_0 = arith.constant 0 : i32
    return %c0_i32, %arg1 : i32, i32
  }
  func.func @transform_3(%arg0: i32, %arg1: i32, %arg2: i32) -> (i32, i32) {
    %c0_i32 = arith.constant 0 : i32
    return %arg0, %arg1 : i32, i32
  }
}

module attributes {stable_mosaic.version = 11 : i64} {
  func.func @_dense_addln_kernel(%arg0: i32, %arg1: i32, %arg2: memref<16x128xbf16, #tpu.memory_space<vmem>>, %arg3: memref<128x128xbf16, #tpu.memory_space<vmem>>, %arg4: memref<1x128xf32, #tpu.memory_space<vmem>>, %arg5: memref<16x128xbf16, #tpu.memory_space<vmem>>, %arg6: memref<1x128xf32, #tpu.memory_space<vmem>>, %arg7: memref<1x128xf32, #tpu.memory_space<vmem>>, %arg8: memref<16x128xbf16, #tpu.memory_space<vmem>>, %arg9: memref<16x128xf32, #tpu.memory_space<vmem>>) attributes {dimension_semantics = [#tpu.dimension_semantics<parallel>, #tpu.dimension_semantics<arbitrary>], iteration_bounds = array<i64: 1, 1>, scalar_prefetch = 0 : i64, scratch_operands = 1 : i64, tpu.core_type = #tpu.core_type<tc>, window_params = [{transform_indices = @transform_0, window_bounds = array<i64: 16, 128>}, {transform_indices = @transform_1, window_bounds = array<i64: 128, 128>}, {pipeline_mode = #tpu.pipeline_mode<synchronous>, transform_indices = @transform_2, window_bounds = array<i64: 1, 128>}, {transform_indices = @transform_3, window_bounds = array<i64: 16, 128>}, {pipeline_mode = #tpu.pipeline_mode<synchronous>, transform_indices = @transform_4, window_bounds = array<i64: 1, 128>}, {pipeline_mode = #tpu.pipeline_mode<synchronous>, transform_indices = @transform_5, window_bounds = array<i64: 1, 128>}, {transform_indices = @transform_6, window_bounds = array<i64: 16, 128>}]} {
    %c0_i32 = arith.constant 0 : i32
    %0 = arith.cmpi eq, %arg1, %c0_i32 : i32
    %1 = arith.extui %0 : i1 to i32
    %c0_i32_0 = arith.constant 0 : i32
    %2 = arith.cmpi ne, %1, %c0_i32_0 : i32
    scf.if %2 {
      %cst_10 = arith.constant 0.000000e+00 : f32
      %12 = vector.broadcast %cst_10 : f32 to vector<16x128xf32>
      %c0_11 = arith.constant 0 : index
      %c0_12 = arith.constant 0 : index
      %13 = vector.load %arg9[%c0_11, %c0_12] : memref<16x128xf32, #tpu.memory_space<vmem>>, vector<16x128xf32>
      tpu.vector_store %arg9[%c0_11, %c0_12], %12 {strides = array<i32>} : memref<16x128xf32, #tpu.memory_space<vmem>>, vector<16x128xf32>,
    } else {
    }
    %c0 = arith.constant 0 : index
    %c0_1 = arith.constant 0 : index
    %3 = vector.load %arg9[%c0, %c0_1] : memref<16x128xf32, #tpu.memory_space<vmem>>, vector<16x128xf32>
    %c0_2 = arith.constant 0 : index
    %c0_3 = arith.constant 0 : index
    %4 = vector.load %arg2[%c0_2, %c0_3] : memref<16x128xbf16, #tpu.memory_space<vmem>>, vector<16x128xbf16>
    %c0_4 = arith.constant 0 : index
    %c0_5 = arith.constant 0 : index
    %5 = vector.load %arg3[%c0_4, %c0_5] : memref<128x128xbf16, #tpu.memory_space<vmem>>, vector<128x128xbf16>
    %cst = arith.constant dense<0.000000e+00> : vector<16x128xf32>
    %6 = tpu.matmul %4, %5, %cst {dimension_numbers = #tpu.dot_dimension_numbers<[1], [0], [0], [1], [0, 0, 1, 1], [], []>} : vector<16x128xbf16>, vector<128x128xbf16>, vector<16x128xf32> -> vector<16x128xf32>
    %7 = arith.addf %3, %6 : vector<16x128xf32>
    %c0_6 = arith.constant 0 : index
    %c0_7 = arith.constant 0 : index
    %8 = vector.load %arg9[%c0_6, %c0_7] : memref<16x128xf32, #tpu.memory_space<vmem>>, vector<16x128xf32>
    tpu.vector_store %arg9[%c0_6, %c0_7], %7 {strides = array<i32>} : memref<16x128xf32, #tpu.memory_space<vmem>>, vector<16x128xf32>,
    %c0_i32_8 = arith.constant 0 : i32
    %9 = arith.cmpi eq, %arg1, %c0_i32_8 : i32
    %10 = arith.extui %9 : i1 to i32
    %c0_i32_9 = arith.constant 0 : i32
    %11 = arith.cmpi ne, %10, %c0_i32_9 : i32
    scf.if %11 {
      %c0_10 = arith.constant 0 : index
      %c0_11 = arith.constant 0 : index
      %12 = vector.load %arg9[%c0_10, %c0_11] : memref<16x128xf32, #tpu.memory_space<vmem>>, vector<16x128xf32>
      %c0_12 = arith.constant 0 : index
      %c0_13 = arith.constant 0 : index
      %13 = vector.load %arg4[%c0_12, %c0_13] : memref<1x128xf32, #tpu.memory_space<vmem>>, vector<1x128xf32>
      %14 = vector.broadcast %13 : vector<1x128xf32> to vector<16x128xf32>
      %15 = arith.addf %12, %14 : vector<16x128xf32>
      %c0_14 = arith.constant 0 : index
      %c0_15 = arith.constant 0 : index
      %16 = vector.load %arg5[%c0_14, %c0_15] : memref<16x128xbf16, #tpu.memory_space<vmem>>, vector<16x128xbf16>
      %17 = arith.extf %16 : vector<16x128xbf16> to vector<16x128xf32>
      %18 = arith.addf %15, %17 : vector<16x128xf32>
      %c0_16 = arith.constant 0 : index
      %c0_17 = arith.constant 0 : index
      %19 = vector.load %arg6[%c0_16, %c0_17] : memref<1x128xf32, #tpu.memory_space<vmem>>, vector<1x128xf32>
      %c0_18 = arith.constant 0 : index
      %c0_19 = arith.constant 0 : index
      %20 = vector.load %arg7[%c0_18, %c0_19] : memref<1x128xf32, #tpu.memory_space<vmem>>, vector<1x128xf32>
      %cst_20 = arith.constant dense<0.000000e+00> : vector<16xf32>
      %21 = vector.multi_reduction <add>, %18, %cst_20 [1] : vector<16x128xf32> to vector<16xf32>
      %22 = vector.shape_cast %21 : vector<16xf32> to vector<16x1xf32>
      %cst_21 = arith.constant 1.280000e+02 : f32
      %23 = vector.broadcast %cst_21 : f32 to vector<16x1xf32>
      %24 = arith.divf %22, %23 : vector<16x1xf32>
      %25 = vector.broadcast %24 : vector<16x1xf32> to vector<16x128xf32>
      %26 = arith.subf %18, %25 : vector<16x128xf32>
      %27 = arith.mulf %26, %26 : vector<16x128xf32>
      %cst_22 = arith.constant dense<0.000000e+00> : vector<16xf32>
      %28 = vector.multi_reduction <add>, %27, %cst_22 [1] : vector<16x128xf32> to vector<16xf32>
      %29 = vector.shape_cast %28 : vector<16xf32> to vector<16x1xf32>
      %cst_23 = arith.constant 1.280000e+02 : f32
      %30 = vector.broadcast %cst_23 : f32 to vector<16x1xf32>
      %31 = arith.divf %29, %30 : vector<16x1xf32>
      %32 = vector.broadcast %24 : vector<16x1xf32> to vector<16x128xf32>
      %33 = arith.subf %18, %32 : vector<16x128xf32>
      %cst_24 = arith.constant 9.99999996E-13 : f32
      %34 = vector.broadcast %cst_24 : f32 to vector<16x1xf32>
      %35 = arith.addf %31, %34 : vector<16x1xf32>
      %36 = math.rsqrt %35 : vector<16x1xf32>
      %37 = vector.broadcast %36 : vector<16x1xf32> to vector<16x128xf32>
      %38 = arith.mulf %33, %37 : vector<16x128xf32>
      %39 = vector.broadcast %19 : vector<1x128xf32> to vector<16x128xf32>
      %40 = arith.mulf %38, %39 : vector<16x128xf32>
      %41 = vector.broadcast %20 : vector<1x128xf32> to vector<16x128xf32>
      %42 = arith.addf %40, %41 : vector<16x128xf32>
      %43 = arith.truncf %42 : vector<16x128xf32> to vector<16x128xbf16>
      %c0_25 = arith.constant 0 : index
      %c0_26 = arith.constant 0 : index
      %44 = vector.load %arg8[%c0_25, %c0_26] : memref<16x128xbf16, #tpu.memory_space<vmem>>, vector<16x128xbf16>
      tpu.vector_store %arg8[%c0_25, %c0_26], %43 {strides = array<i32>} : memref<16x128xbf16, #tpu.memory_space<vmem>>, vector<16x128xbf16>,
    } else {
    }
    return
  }
  func.func @transform_0(%arg0: i32, %arg1: i32) -> (i32, i32) {
    %c0_i32 = arith.constant 0 : i32
    return %arg0, %arg1 : i32, i32
  }
  func.func @transform_1(%arg0: i32, %arg1: i32) -> (i32, i32) {
    %c0_i32 = arith.constant 0 : i32
    %c0_i32_0 = arith.constant 0 : i32
    return %arg1, %c0_i32 : i32, i32
  }
  func.func @transform_2(%arg0: i32, %arg1: i32) -> (i32, i32) {
    %c0_i32 = arith.constant 0 : i32
    %c0_i32_0 = arith.constant 0 : i32
    %c0_i32_1 = arith.constant 0 : i32
    return %c0_i32, %c0_i32_0 : i32, i32
  }
  func.func @transform_3(%arg0: i32, %arg1: i32) -> (i32, i32) {
    %c0_i32 = arith.constant 0 : i32
    %c0_i32_0 = arith.constant 0 : i32
    return %arg0, %c0_i32 : i32, i32
  }
  func.func @transform_4(%arg0: i32, %arg1: i32) -> (i32, i32) {
    %c0_i32 = arith.constant 0 : i32
    %c0_i32_0 = arith.constant 0 : i32
    %c0_i32_1 = arith.constant 0 : i32
    return %c0_i32, %c0_i32_0 : i32, i32
  }
  func.func @transform_5(%arg0: i32, %arg1: i32) -> (i32, i32) {
    %c0_i32 = arith.constant 0 : i32
    %c0_i32_0 = arith.constant 0 : i32
    %c0_i32_1 = arith.constant 0 : i32
    return %c0_i32, %c0_i32_0 : i32, i32
  }
  func.func @transform_6(%arg0: i32, %arg1: i32) -> (i32, i32) {
    %c0_i32 = arith.constant 0 : i32
    %c0_i32_0 = arith.constant 0 : i32
    return %arg0, %c0_i32 : i32, i32
  }
}

module attributes {stable_mosaic.version = 11 : i64} {
  func.func @_dense_addln_kernel(%arg0: i32, %arg1: i32, %arg2: memref<16x256xbf16, #tpu.memory_space<vmem>>, %arg3: memref<256x128xbf16, #tpu.memory_space<vmem>>, %arg4: memref<1x128xf32, #tpu.memory_space<vmem>>, %arg5: memref<16x128xbf16, #tpu.memory_space<vmem>>, %arg6: memref<1x128xf32, #tpu.memory_space<vmem>>, %arg7: memref<1x128xf32, #tpu.memory_space<vmem>>, %arg8: memref<16x128xbf16, #tpu.memory_space<vmem>>, %arg9: memref<16x128xf32, #tpu.memory_space<vmem>>) attributes {dimension_semantics = [#tpu.dimension_semantics<parallel>, #tpu.dimension_semantics<arbitrary>], iteration_bounds = array<i64: 1, 1>, scalar_prefetch = 0 : i64, scratch_operands = 1 : i64, tpu.core_type = #tpu.core_type<tc>, window_params = [{transform_indices = @transform_0, window_bounds = array<i64: 16, 256>}, {transform_indices = @transform_1, window_bounds = array<i64: 256, 128>}, {pipeline_mode = #tpu.pipeline_mode<synchronous>, transform_indices = @transform_2, window_bounds = array<i64: 1, 128>}, {transform_indices = @transform_3, window_bounds = array<i64: 16, 128>}, {pipeline_mode = #tpu.pipeline_mode<synchronous>, transform_indices = @transform_4, window_bounds = array<i64: 1, 128>}, {pipeline_mode = #tpu.pipeline_mode<synchronous>, transform_indices = @transform_5, window_bounds = array<i64: 1, 128>}, {transform_indices = @transform_6, window_bounds = array<i64: 16, 128>}]} {
    %c0_i32 = arith.constant 0 : i32
    %0 = arith.cmpi eq, %arg1, %c0_i32 : i32
    %1 = arith.extui %0 : i1 to i32
    %c0_i32_0 = arith.constant 0 : i32
    %2 = arith.cmpi ne, %1, %c0_i32_0 : i32
    scf.if %2 {
      %cst_10 = arith.constant 0.000000e+00 : f32
      %12 = vector.broadcast %cst_10 : f32 to vector<16x128xf32>
      %c0_11 = arith.constant 0 : index
      %c0_12 = arith.constant 0 : index
      %13 = vector.load %arg9[%c0_11, %c0_12] : memref<16x128xf32, #tpu.memory_space<vmem>>, vector<16x128xf32>
      tpu.vector_store %arg9[%c0_11, %c0_12], %12 {strides = array<i32>} : memref<16x128xf32, #tpu.memory_space<vmem>>, vector<16x128xf32>,
    } else {
    }
    %c0 = arith.constant 0 : index
    %c0_1 = arith.constant 0 : index
    %3 = vector.load %arg9[%c0, %c0_1] : memref<16x128xf32, #tpu.memory_space<vmem>>, vector<16x128xf32>
    %c0_2 = arith.constant 0 : index
    %c0_3 = arith.constant 0 : index
    %4 = vector.load %arg2[%c0_2, %c0_3] : memref<16x256xbf16, #tpu.memory_space<vmem>>, vector<16x256xbf16>
    %c0_4 = arith.constant 0 : index
    %c0_5 = arith.constant 0 : index
    %5 = vector.load %arg3[%c0_4, %c0_5] : memref<256x128xbf16, #tpu.memory_space<vmem>>, vector<256x128xbf16>
    %cst = arith.constant dense<0.000000e+00> : vector<16x128xf32>
    %6 = tpu.matmul %4, %5, %cst {dimension_numbers = #tpu.dot_dimension_numbers<[1], [0], [0], [1], [0, 0, 1, 1], [], []>} : vector<16x256xbf16>, vector<256x128xbf16>, vector<16x128xf32> -> vector<16x128xf32>
    %7 = arith.addf %3, %6 : vector<16x128xf32>
    %c0_6 = arith.constant 0 : index
    %c0_7 = arith.constant 0 : index
    %8 = vector.load %arg9[%c0_6, %c0_7] : memref<16x128xf32, #tpu.memory_space<vmem>>, vector<16x128xf32>
    tpu.vector_store %arg9[%c0_6, %c0_7], %7 {strides = array<i32>} : memref<16x128xf32, #tpu.memory_space<vmem>>, vector<16x128xf32>,
    %c0_i32_8 = arith.constant 0 : i32
    %9 = arith.cmpi eq, %arg1, %c0_i32_8 : i32
    %10 = arith.extui %9 : i1 to i32
    %c0_i32_9 = arith.constant 0 : i32
    %11 = arith.cmpi ne, %10, %c0_i32_9 : i32
    scf.if %11 {
      %c0_10 = arith.constant 0 : index
      %c0_11 = arith.constant 0 : index
      %12 = vector.load %arg9[%c0_10, %c0_11] : memref<16x128xf32, #tpu.memory_space<vmem>>, vector<16x128xf32>
      %c0_12 = arith.constant 0 : index
      %c0_13 = arith.constant 0 : index
      %13 = vector.load %arg4[%c0_12, %c0_13] : memref<1x128xf32, #tpu.memory_space<vmem>>, vector<1x128xf32>
      %14 = vector.broadcast %13 : vector<1x128xf32> to vector<16x128xf32>
      %15 = arith.addf %12, %14 : vector<16x128xf32>
      %c0_14 = arith.constant 0 : index
      %c0_15 = arith.constant 0 : index
      %16 = vector.load %arg5[%c0_14, %c0_15] : memref<16x128xbf16, #tpu.memory_space<vmem>>, vector<16x128xbf16>
      %17 = arith.extf %16 : vector<16x128xbf16> to vector<16x128xf32>
      %18 = arith.addf %15, %17 : vector<16x128xf32>
      %c0_16 = arith.constant 0 : index
      %c0_17 = arith.constant 0 : index
      %19 = vector.load %arg6[%c0_16, %c0_17] : memref<1x128xf32, #tpu.memory_space<vmem>>, vector<1x128xf32>
      %c0_18 = arith.constant 0 : index
      %c0_19 = arith.constant 0 : index
      %20 = vector.load %arg7[%c0_18, %c0_19] : memref<1x128xf32, #tpu.memory_space<vmem>>, vector<1x128xf32>
      %cst_20 = arith.constant dense<0.000000e+00> : vector<16xf32>
      %21 = vector.multi_reduction <add>, %18, %cst_20 [1] : vector<16x128xf32> to vector<16xf32>
      %22 = vector.shape_cast %21 : vector<16xf32> to vector<16x1xf32>
      %cst_21 = arith.constant 1.280000e+02 : f32
      %23 = vector.broadcast %cst_21 : f32 to vector<16x1xf32>
      %24 = arith.divf %22, %23 : vector<16x1xf32>
      %25 = vector.broadcast %24 : vector<16x1xf32> to vector<16x128xf32>
      %26 = arith.subf %18, %25 : vector<16x128xf32>
      %27 = arith.mulf %26, %26 : vector<16x128xf32>
      %cst_22 = arith.constant dense<0.000000e+00> : vector<16xf32>
      %28 = vector.multi_reduction <add>, %27, %cst_22 [1] : vector<16x128xf32> to vector<16xf32>
      %29 = vector.shape_cast %28 : vector<16xf32> to vector<16x1xf32>
      %cst_23 = arith.constant 1.280000e+02 : f32
      %30 = vector.broadcast %cst_23 : f32 to vector<16x1xf32>
      %31 = arith.divf %29, %30 : vector<16x1xf32>
      %32 = vector.broadcast %24 : vector<16x1xf32> to vector<16x128xf32>
      %33 = arith.subf %18, %32 : vector<16x128xf32>
      %cst_24 = arith.constant 9.99999996E-13 : f32
      %34 = vector.broadcast %cst_24 : f32 to vector<16x1xf32>
      %35 = arith.addf %31, %34 : vector<16x1xf32>
      %36 = math.rsqrt %35 : vector<16x1xf32>
      %37 = vector.broadcast %36 : vector<16x1xf32> to vector<16x128xf32>
      %38 = arith.mulf %33, %37 : vector<16x128xf32>
      %39 = vector.broadcast %19 : vector<1x128xf32> to vector<16x128xf32>
      %40 = arith.mulf %38, %39 : vector<16x128xf32>
      %41 = vector.broadcast %20 : vector<1x128xf32> to vector<16x128xf32>
      %42 = arith.addf %40, %41 : vector<16x128xf32>
      %43 = arith.truncf %42 : vector<16x128xf32> to vector<16x128xbf16>
      %c0_25 = arith.constant 0 : index
      %c0_26 = arith.constant 0 : index
      %44 = vector.load %arg8[%c0_25, %c0_26] : memref<16x128xbf16, #tpu.memory_space<vmem>>, vector<16x128xbf16>
      tpu.vector_store %arg8[%c0_25, %c0_26], %43 {strides = array<i32>} : memref<16x128xbf16, #tpu.memory_space<vmem>>, vector<16x128xbf16>,
    } else {
    }
    return
  }
  func.func @transform_0(%arg0: i32, %arg1: i32) -> (i32, i32) {
    %c0_i32 = arith.constant 0 : i32
    return %arg0, %arg1 : i32, i32
  }
  func.func @transform_1(%arg0: i32, %arg1: i32) -> (i32, i32) {
    %c0_i32 = arith.constant 0 : i32
    %c0_i32_0 = arith.constant 0 : i32
    return %arg1, %c0_i32 : i32, i32
  }
  func.func @transform_2(%arg0: i32, %arg1: i32) -> (i32, i32) {
    %c0_i32 = arith.constant 0 : i32
    %c0_i32_0 = arith.constant 0 : i32
    %c0_i32_1 = arith.constant 0 : i32
    return %c0_i32, %c0_i32_0 : i32, i32
  }
  func.func @transform_3(%arg0: i32, %arg1: i32) -> (i32, i32) {
    %c0_i32 = arith.constant 0 : i32
    %c0_i32_0 = arith.constant 0 : i32
    return %arg0, %c0_i32 : i32, i32
  }
  func.func @transform_4(%arg0: i32, %arg1: i32) -> (i32, i32) {
    %c0_i32 = arith.constant 0 : i32
    %c0_i32_0 = arith.constant 0 : i32
    %c0_i32_1 = arith.constant 0 : i32
    return %c0_i32, %c0_i32_0 : i32, i32
  }
  func.func @transform_5(%arg0: i32, %arg1: i32) -> (i32, i32) {
    %c0_i32 = arith.constant 0 : i32
    %c0_i32_0 = arith.constant 0 : i32
    %c0_i32_1 = arith.constant 0 : i32
    return %c0_i32, %c0_i32_0 : i32, i32
  }
  func.func @transform_6(%arg0: i32, %arg1: i32) -> (i32, i32) {
    %c0_i32 = arith.constant 0 : i32
    %c0_i32_0 = arith.constant 0 : i32
    return %arg0, %c0_i32 : i32, i32
  }
}

module attributes {stable_mosaic.version = 11 : i64} {
  func.func @_head_kernel(%arg0: i32, %arg1: memref<1x8x128xbf16, #tpu.memory_space<vmem>>, %arg2: memref<128x32xbf16, #tpu.memory_space<vmem>>, %arg3: memref<1x32xf32, #tpu.memory_space<vmem>>, %arg4: memref<32x4xbf16, #tpu.memory_space<vmem>>, %arg5: memref<1x4xf32, #tpu.memory_space<vmem>>, %arg6: memref<2x4xf32, #tpu.memory_space<vmem>>, %arg7: memref<2x1xf32, #tpu.memory_space<vmem>>, %arg8: memref<1x1xf32, #tpu.memory_space<vmem>>, %arg9: memref<2x4xf32, #tpu.memory_space<vmem>>, %arg10: memref<2x128xf32, #tpu.memory_space<vmem>>) attributes {dimension_semantics = [#tpu.dimension_semantics<arbitrary>], iteration_bounds = array<i64: 2>, scalar_prefetch = 0 : i64, scratch_operands = 1 : i64, tpu.core_type = #tpu.core_type<tc>, window_params = [{transform_indices = @transform_0, window_bounds = array<i64: 1, 8, 128>}, {pipeline_mode = #tpu.pipeline_mode<synchronous>, transform_indices = @transform_1, window_bounds = array<i64: 128, 32>}, {pipeline_mode = #tpu.pipeline_mode<synchronous>, transform_indices = @transform_2, window_bounds = array<i64: 1, 32>}, {pipeline_mode = #tpu.pipeline_mode<synchronous>, transform_indices = @transform_3, window_bounds = array<i64: 32, 4>}, {pipeline_mode = #tpu.pipeline_mode<synchronous>, transform_indices = @transform_4, window_bounds = array<i64: 1, 4>}, {pipeline_mode = #tpu.pipeline_mode<synchronous>, transform_indices = @transform_5, window_bounds = array<i64: 2, 4>}, {pipeline_mode = #tpu.pipeline_mode<synchronous>, transform_indices = @transform_6, window_bounds = array<i64: 2, 1>}, {pipeline_mode = #tpu.pipeline_mode<synchronous>, transform_indices = @transform_7, window_bounds = array<i64: 1, 1>}, {pipeline_mode = #tpu.pipeline_mode<synchronous>, transform_indices = @transform_8, window_bounds = array<i64: 2, 4>}]} {
    %c0 = arith.constant 0 : index
    %c0_0 = arith.constant 0 : index
    %c0_1 = arith.constant 0 : index
    %0 = vector.load %arg1[%c0, %c0_0, %c0_1] : memref<1x8x128xbf16, #tpu.memory_space<vmem>>, vector<1x8x128xbf16>
    %1 = vector.shape_cast %0 : vector<1x8x128xbf16> to vector<8x128xbf16>
    %2 = arith.extf %1 : vector<8x128xbf16> to vector<8x128xf32>
    %cst = arith.constant dense<0.000000e+00> : vector<128xf32>
    %3 = vector.multi_reduction <add>, %2, %cst [0] : vector<8x128xf32> to vector<128xf32>
    %4 = vector.shape_cast %3 : vector<128xf32> to vector<1x128xf32>
    %cst_2 = arith.constant 1.250000e-01 : f32
    %5 = vector.broadcast %cst_2 : f32 to vector<1x128xf32>
    %6 = arith.mulf %4, %5 : vector<1x128xf32>
    %7 = arith.index_cast %arg0 : i32 to index
    %c0_3 = arith.constant 0 : index
    %8 = vector.load %arg10[%7, %c0_3] : memref<2x128xf32, #tpu.memory_space<vmem>>, vector<1x128xf32>
    tpu.vector_store %arg10[%7, %c0_3], %6 {strides = array<i32>} : memref<2x128xf32, #tpu.memory_space<vmem>>, vector<1x128xf32>,
    %c1_i32 = arith.constant 1 : i32
    %9 = arith.cmpi eq, %arg0, %c1_i32 : i32
    %10 = arith.extui %9 : i1 to i32
    %c0_i32 = arith.constant 0 : i32
    %11 = arith.cmpi ne, %10, %c0_i32 : i32
    scf.if %11 {
      %c0_4 = arith.constant 0 : index
      %c0_5 = arith.constant 0 : index
      %12 = vector.load %arg10[%c0_4, %c0_5] : memref<2x128xf32, #tpu.memory_space<vmem>>, vector<2x128xf32>
      %13 = arith.truncf %12 : vector<2x128xf32> to vector<2x128xbf16>
      %c0_6 = arith.constant 0 : index
      %c0_7 = arith.constant 0 : index
      %14 = vector.load %arg2[%c0_6, %c0_7] : memref<128x32xbf16, #tpu.memory_space<vmem>>, vector<128x32xbf16>
      %cst_8 = arith.constant dense<0.000000e+00> : vector<2x32xf32>
      %15 = tpu.matmul %13, %14, %cst_8 {dimension_numbers = #tpu.dot_dimension_numbers<[1], [0], [0], [1], [0, 0, 1, 1], [], []>} : vector<2x128xbf16>, vector<128x32xbf16>, vector<2x32xf32> -> vector<2x32xf32>
      %c0_9 = arith.constant 0 : index
      %c0_10 = arith.constant 0 : index
      %16 = vector.load %arg3[%c0_9, %c0_10] : memref<1x32xf32, #tpu.memory_space<vmem>>, vector<1x32xf32>
      %17 = vector.broadcast %16 : vector<1x32xf32> to vector<2x32xf32>
      %18 = arith.addf %15, %17 : vector<2x32xf32>
      %cst_11 = arith.constant 5.000000e-01 : f32
      %19 = vector.broadcast %cst_11 : f32 to vector<2x32xf32>
      %20 = arith.mulf %19, %18 : vector<2x32xf32>
      %cst_12 = arith.constant 2.000000e+00 : f32
      %21 = math.sqrt %cst_12 : f32
      %cst_13 = arith.constant 1.000000e+00 : f32
      %22 = arith.divf %cst_13, %21 : f32
      %23 = vector.broadcast %22 : f32 to vector<2x32xf32>
      %24 = arith.mulf %18, %23 : vector<2x32xf32>
      %25 = math.erf %24 : vector<2x32xf32>
      %cst_14 = arith.constant 1.000000e+00 : f32
      %26 = vector.broadcast %cst_14 : f32 to vector<2x32xf32>
      %27 = arith.addf %26, %25 : vector<2x32xf32>
      %28 = arith.mulf %20, %27 : vector<2x32xf32>
      %29 = arith.truncf %28 : vector<2x32xf32> to vector<2x32xbf16>
      %c0_15 = arith.constant 0 : index
      %c0_16 = arith.constant 0 : index
      %30 = vector.load %arg4[%c0_15, %c0_16] : memref<32x4xbf16, #tpu.memory_space<vmem>>, vector<32x4xbf16>
      %cst_17 = arith.constant dense<0.000000e+00> : vector<2x4xf32>
      %31 = tpu.matmul %29, %30, %cst_17 {dimension_numbers = #tpu.dot_dimension_numbers<[1], [0], [0], [1], [0, 0, 1, 1], [], []>} : vector<2x32xbf16>, vector<32x4xbf16>, vector<2x4xf32> -> vector<2x4xf32>
      %c0_18 = arith.constant 0 : index
      %c0_19 = arith.constant 0 : index
      %32 = vector.load %arg5[%c0_18, %c0_19] : memref<1x4xf32, #tpu.memory_space<vmem>>, vector<1x4xf32>
      %33 = vector.broadcast %32 : vector<1x4xf32> to vector<2x4xf32>
      %34 = arith.addf %31, %33 : vector<2x4xf32>
      %c0_20 = arith.constant 0 : index
      %c0_21 = arith.constant 0 : index
      %35 = vector.load %arg9[%c0_20, %c0_21] : memref<2x4xf32, #tpu.memory_space<vmem>>, vector<2x4xf32>
      tpu.vector_store %arg9[%c0_20, %c0_21], %34 {strides = array<i32>} : memref<2x4xf32, #tpu.memory_space<vmem>>, vector<2x4xf32>,
      %cst_22 = arith.constant dense<0xFF800000> : vector<2xf32>
      %36 = vector.multi_reduction <maximumf>, %34, %cst_22 [1] : vector<2x4xf32> to vector<2xf32>
      %37 = vector.shape_cast %36 : vector<2xf32> to vector<2x1xf32>
      %38 = vector.broadcast %37 : vector<2x1xf32> to vector<2x4xf32>
      %39 = arith.subf %34, %38 : vector<2x4xf32>
      %40 = math.exp %39 : vector<2x4xf32>
      %cst_23 = arith.constant dense<0.000000e+00> : vector<2xf32>
      %41 = vector.multi_reduction <add>, %40, %cst_23 [1] : vector<2x4xf32> to vector<2xf32>
      %42 = vector.shape_cast %41 : vector<2xf32> to vector<2x1xf32>
      %43 = math.log %42 : vector<2x1xf32>
      %44 = arith.addf %43, %37 : vector<2x1xf32>
      %c0_24 = arith.constant 0 : index
      %c0_25 = arith.constant 0 : index
      %45 = vector.load %arg6[%c0_24, %c0_25] : memref<2x4xf32, #tpu.memory_space<vmem>>, vector<2x4xf32>
      %46 = arith.mulf %45, %34 : vector<2x4xf32>
      %cst_26 = arith.constant dense<0.000000e+00> : vector<2xf32>
      %47 = vector.multi_reduction <add>, %46, %cst_26 [1] : vector<2x4xf32> to vector<2xf32>
      %48 = vector.shape_cast %47 : vector<2xf32> to vector<2x1xf32>
      %49 = arith.subf %44, %48 : vector<2x1xf32>
      %c0_27 = arith.constant 0 : index
      %c0_28 = arith.constant 0 : index
      %50 = vector.load %arg7[%c0_27, %c0_28] : memref<2x1xf32, #tpu.memory_space<vmem>>, vector<2x1xf32>
      %51 = arith.mulf %50, %49 : vector<2x1xf32>
      %52 = vector.shape_cast %51 : vector<2x1xf32> to vector<1x2x1xf32>
      %cst_29 = arith.constant dense<0.000000e+00> : vector<1xf32>
      %53 = vector.multi_reduction <add>, %52, %cst_29 [1, 2] : vector<1x2x1xf32> to vector<1xf32>
      %54 = vector.shape_cast %53 : vector<1xf32> to vector<1x1x1xf32>
      %55 = vector.extract %54[0, 0, 0] : f32 from vector<1x1x1xf32>
      %56 = vector.shape_cast %50 : vector<2x1xf32> to vector<1x2x1xf32>
      %cst_30 = arith.constant dense<0.000000e+00> : vector<1xf32>
      %57 = vector.multi_reduction <add>, %56, %cst_30 [1, 2] : vector<1x2x1xf32> to vector<1xf32>
      %58 = vector.shape_cast %57 : vector<1xf32> to vector<1x1x1xf32>
      %59 = vector.extract %58[0, 0, 0] : f32 from vector<1x1x1xf32>
      %60 = arith.divf %55, %59 : f32
      %61 = vector.broadcast %60 : f32 to vector<1x1xf32>
      %c0_31 = arith.constant 0 : index
      %c0_32 = arith.constant 0 : index
      %62 = vector.load %arg8[%c0_31, %c0_32] : memref<1x1xf32, #tpu.memory_space<vmem>>, vector<1x1xf32>
      tpu.vector_store %arg8[%c0_31, %c0_32], %61 {strides = array<i32>} : memref<1x1xf32, #tpu.memory_space<vmem>>, vector<1x1xf32>,
    } else {
    }
    return
  }
  func.func @transform_0(%arg0: i32) -> (i32, i32, i32) {
    %c0_i32 = arith.constant 0 : i32
    %c0_i32_0 = arith.constant 0 : i32
    %c0_i32_1 = arith.constant 0 : i32
    return %arg0, %c0_i32, %c0_i32_0 : i32, i32, i32
  }
  func.func @transform_1(%arg0: i32) -> (i32, i32) {
    %c0_i32 = arith.constant 0 : i32
    %c0_i32_0 = arith.constant 0 : i32
    %c0_i32_1 = arith.constant 0 : i32
    return %c0_i32, %c0_i32_0 : i32, i32
  }
  func.func @transform_2(%arg0: i32) -> (i32, i32) {
    %c0_i32 = arith.constant 0 : i32
    %c0_i32_0 = arith.constant 0 : i32
    %c0_i32_1 = arith.constant 0 : i32
    return %c0_i32, %c0_i32_0 : i32, i32
  }
  func.func @transform_3(%arg0: i32) -> (i32, i32) {
    %c0_i32 = arith.constant 0 : i32
    %c0_i32_0 = arith.constant 0 : i32
    %c0_i32_1 = arith.constant 0 : i32
    return %c0_i32, %c0_i32_0 : i32, i32
  }
  func.func @transform_4(%arg0: i32) -> (i32, i32) {
    %c0_i32 = arith.constant 0 : i32
    %c0_i32_0 = arith.constant 0 : i32
    %c0_i32_1 = arith.constant 0 : i32
    return %c0_i32, %c0_i32_0 : i32, i32
  }
  func.func @transform_5(%arg0: i32) -> (i32, i32) {
    %c0_i32 = arith.constant 0 : i32
    %c0_i32_0 = arith.constant 0 : i32
    %c0_i32_1 = arith.constant 0 : i32
    return %c0_i32, %c0_i32_0 : i32, i32
  }
  func.func @transform_6(%arg0: i32) -> (i32, i32) {
    %c0_i32 = arith.constant 0 : i32
    %c0_i32_0 = arith.constant 0 : i32
    %c0_i32_1 = arith.constant 0 : i32
    return %c0_i32, %c0_i32_0 : i32, i32
  }
  func.func @transform_7(%arg0: i32) -> (i32, i32) {
    %c0_i32 = arith.constant 0 : i32
    %c0_i32_0 = arith.constant 0 : i32
    %c0_i32_1 = arith.constant 0 : i32
    return %c0_i32, %c0_i32_0 : i32, i32
  }
  func.func @transform_8(%arg0: i32) -> (i32, i32) {
    %c0_i32 = arith.constant 0 : i32
    %c0_i32_0 = arith.constant 0 : i32
    %c0_i32_1 = arith.constant 0 : i32
    return %c0_i32, %c0_i32_0 : i32, i32
  }
}

module attributes {stable_mosaic.version = 11 : i64} {
  func.func @_dense_kernel(%arg0: i32, %arg1: i32, %arg2: i32, %arg3: memref<16x128xbf16, #tpu.memory_space<vmem>>, %arg4: memref<128x256xbf16, #tpu.memory_space<vmem>>, %arg5: memref<1x256xf32, #tpu.memory_space<vmem>>, %arg6: memref<16x256xbf16, #tpu.memory_space<vmem>>, %arg7: memref<16x256xf32, #tpu.memory_space<vmem>>) attributes {dimension_semantics = [#tpu.dimension_semantics<parallel>, #tpu.dimension_semantics<parallel>, #tpu.dimension_semantics<arbitrary>], iteration_bounds = array<i64: 1, 1, 1>, scalar_prefetch = 0 : i64, scratch_operands = 1 : i64, tpu.core_type = #tpu.core_type<tc>, window_params = [{transform_indices = @transform_0, window_bounds = array<i64: 16, 128>}, {transform_indices = @transform_1, window_bounds = array<i64: 128, 256>}, {transform_indices = @transform_2, window_bounds = array<i64: 1, 256>}, {transform_indices = @transform_3, window_bounds = array<i64: 16, 256>}]} {
    %c0_i32 = arith.constant 0 : i32
    %0 = arith.cmpi eq, %arg2, %c0_i32 : i32
    %1 = arith.extui %0 : i1 to i32
    %c0_i32_0 = arith.constant 0 : i32
    %2 = arith.cmpi ne, %1, %c0_i32_0 : i32
    scf.if %2 {
      %cst_10 = arith.constant 0.000000e+00 : f32
      %12 = vector.broadcast %cst_10 : f32 to vector<16x256xf32>
      %c0_11 = arith.constant 0 : index
      %c0_12 = arith.constant 0 : index
      %13 = vector.load %arg7[%c0_11, %c0_12] : memref<16x256xf32, #tpu.memory_space<vmem>>, vector<16x256xf32>
      tpu.vector_store %arg7[%c0_11, %c0_12], %12 {strides = array<i32>} : memref<16x256xf32, #tpu.memory_space<vmem>>, vector<16x256xf32>,
    } else {
    }
    %c0 = arith.constant 0 : index
    %c0_1 = arith.constant 0 : index
    %3 = vector.load %arg7[%c0, %c0_1] : memref<16x256xf32, #tpu.memory_space<vmem>>, vector<16x256xf32>
    %c0_2 = arith.constant 0 : index
    %c0_3 = arith.constant 0 : index
    %4 = vector.load %arg3[%c0_2, %c0_3] : memref<16x128xbf16, #tpu.memory_space<vmem>>, vector<16x128xbf16>
    %c0_4 = arith.constant 0 : index
    %c0_5 = arith.constant 0 : index
    %5 = vector.load %arg4[%c0_4, %c0_5] : memref<128x256xbf16, #tpu.memory_space<vmem>>, vector<128x256xbf16>
    %cst = arith.constant dense<0.000000e+00> : vector<16x256xf32>
    %6 = tpu.matmul %4, %5, %cst {dimension_numbers = #tpu.dot_dimension_numbers<[1], [0], [0], [1], [0, 0, 1, 1], [], []>} : vector<16x128xbf16>, vector<128x256xbf16>, vector<16x256xf32> -> vector<16x256xf32>
    %7 = arith.addf %3, %6 : vector<16x256xf32>
    %c0_6 = arith.constant 0 : index
    %c0_7 = arith.constant 0 : index
    %8 = vector.load %arg7[%c0_6, %c0_7] : memref<16x256xf32, #tpu.memory_space<vmem>>, vector<16x256xf32>
    tpu.vector_store %arg7[%c0_6, %c0_7], %7 {strides = array<i32>} : memref<16x256xf32, #tpu.memory_space<vmem>>, vector<16x256xf32>,
    %c0_i32_8 = arith.constant 0 : i32
    %9 = arith.cmpi eq, %arg2, %c0_i32_8 : i32
    %10 = arith.extui %9 : i1 to i32
    %c0_i32_9 = arith.constant 0 : i32
    %11 = arith.cmpi ne, %10, %c0_i32_9 : i32
    scf.if %11 {
      %c0_10 = arith.constant 0 : index
      %c0_11 = arith.constant 0 : index
      %12 = vector.load %arg7[%c0_10, %c0_11] : memref<16x256xf32, #tpu.memory_space<vmem>>, vector<16x256xf32>
      %c0_12 = arith.constant 0 : index
      %c0_13 = arith.constant 0 : index
      %13 = vector.load %arg5[%c0_12, %c0_13] : memref<1x256xf32, #tpu.memory_space<vmem>>, vector<1x256xf32>
      %14 = vector.broadcast %13 : vector<1x256xf32> to vector<16x256xf32>
      %15 = arith.addf %12, %14 : vector<16x256xf32>
      %cst_14 = arith.constant 5.000000e-01 : f32
      %16 = vector.broadcast %cst_14 : f32 to vector<16x256xf32>
      %17 = arith.mulf %16, %15 : vector<16x256xf32>
      %cst_15 = arith.constant 2.000000e+00 : f32
      %18 = math.sqrt %cst_15 : f32
      %cst_16 = arith.constant 1.000000e+00 : f32
      %19 = arith.divf %cst_16, %18 : f32
      %20 = vector.broadcast %19 : f32 to vector<16x256xf32>
      %21 = arith.mulf %15, %20 : vector<16x256xf32>
      %22 = math.erf %21 : vector<16x256xf32>
      %cst_17 = arith.constant 1.000000e+00 : f32
      %23 = vector.broadcast %cst_17 : f32 to vector<16x256xf32>
      %24 = arith.addf %23, %22 : vector<16x256xf32>
      %25 = arith.mulf %17, %24 : vector<16x256xf32>
      %26 = arith.truncf %25 : vector<16x256xf32> to vector<16x256xbf16>
      %c0_18 = arith.constant 0 : index
      %c0_19 = arith.constant 0 : index
      %27 = vector.load %arg6[%c0_18, %c0_19] : memref<16x256xbf16, #tpu.memory_space<vmem>>, vector<16x256xbf16>
      tpu.vector_store %arg6[%c0_18, %c0_19], %26 {strides = array<i32>} : memref<16x256xbf16, #tpu.memory_space<vmem>>, vector<16x256xbf16>,
    } else {
    }
    return
  }
  func.func @transform_0(%arg0: i32, %arg1: i32, %arg2: i32) -> (i32, i32) {
    %c0_i32 = arith.constant 0 : i32
    return %arg0, %arg2 : i32, i32
  }
  func.func @transform_1(%arg0: i32, %arg1: i32, %arg2: i32) -> (i32, i32) {
    %c0_i32 = arith.constant 0 : i32
    return %arg2, %arg1 : i32, i32
  }
  func.func @transform_2(%arg0: i32, %arg1: i32, %arg2: i32) -> (i32, i32) {
    %c0_i32 = arith.constant 0 : i32
    %c0_i32_0 = arith.constant 0 : i32
    return %c0_i32, %arg1 : i32, i32
  }
  func.func @transform_3(%arg0: i32, %arg1: i32, %arg2: i32) -> (i32, i32) {
    %c0_i32 = arith.constant 0 : i32
    return %arg0, %arg1 : i32, i32
  }
}

</mosaic_0001>

<bundles_post_ra>
// kernel: scibert_forward.12
= control target key start
LH: loop header
LB: loop body
LE: loop exit
PB: predicated region body
PF: predicated region fallthrough
CT: control target
= control target key end

     0   :  { %s397_s18 = smov 0   ;;  %s426_s0 = inlined_call_operand.vmem [shape: f32[2,8,128], index: 0, kind: input, shape index: {}]   ;;  %s427_s1 = inlined_call_operand.vmem [shape: f32[2,8,128], index: 1, kind: input, shape index: {}]   ;;  %s428_s2 = inlined_call_operand.vmem [shape: f32[8,128], index: 2, kind: input, shape index: {}]   ;;  %s429_s3 = inlined_call_operand.vmem [shape: f32[1,128], index: 3, kind: input, shape index: {}]   ;;  %s430_s4 = inlined_call_operand.vmem [shape: f32[1,128], index: 4, kind: input, shape index: {}]   ;;  %s431_s5 = inlined_call_operand.vmem [shape: bf16[2,8,128], index: 5, kind: output, shape index: {}]  }
   0x1 LB: > { %s337_s19 = sadd.s32 4294967295, %s365_s18   ;;  %p341_p0 = scmp.ge.s32.totalorder %s365_s18, 1  ;;  %s365_s18 = sphi %s397_s18, %s15_s18  }
   0x2   : > { %p195_p1 = scmp.lt.s32.totalorder %s365_s18, 3 }
   0x4   : > { %p196_p2 = pnand %p341_p0, %p195_p1 }
   0x5   : > { %p225_p3 = scmp.lt.s32.totalorder (!%p196_p2), %s337_s19, 1 }
   0x6   : > { %199 = sbr.rel (%p196_p2) target bundleno = 329 (0x149), region = 40 }
   0xb   : > { %s433_s19 = smov (!%p225_p3, %s337_s19), 1  ;;  %v240_v2 = vld [vmem:[%s428_s2] sm:$0xff] }
   0xc   : > { %s342_s20 = sshll.u32 %s433_s19, 3  ;;  %v345_v13 = vld [vmem:[%s429_s3] ss:$0 sm:$0xff]  ;;  %s344_s8 = sshll.u32 %s433_s19, 2 }
   0xd   : > { %s228_s23 = scalar_lea.vmem %s426_s0, %s342_s20  ;;  %s232_s26 = scalar_lea.vmem %s427_s1, %s342_s20  ;;  %v346_v15 = vld [vmem:[%s430_s4] ss:$0 sm:$0xff] }
   0xe   : > { %v237_v0 = vld [vmem:[%s228_s23] sm:$0xff]  ;;  %s236_s11 = scalar_lea.vmem %s431_s5, %s344_s8 }
   0xf   : > { %v238_v1 = vld [vmem:[%s232_s26] sm:$0xff] }
  0x10   : > { %v239_v3 = vadd.f32 %v238_v1, %v237_v0 }
  0x12   : > { %v241_v4 = vadd.f32 %v240_v2, %v239_v3 }
  0x14   : > { %244 = vadd.xlane.f32.xlu0 %v241_v4 }
  0x9d   : > { %v245_v5 = vpop.xlane.xlu0 %244 }
  0x9e   : > { %v247_v6 = vmul.f32 0.0078125, %v245_v5 }
  0xa0   : > { %v248_v7 = vsub.f32 %v241_v4, %v247_v6 }
  0xa2   : > { %v249_v8 = vmul.f32 %v248_v7, %v248_v7 }
  0xa4   : > { %250 = vadd.xlane.f32.xlu0 %v249_v8 }
 0x12d   : > { %v251_v9 = vpop.xlane.xlu0 %250 }
 0x12e   : > { %v252_v10 = vmul.f32 0.0078125, %v251_v9 }
 0x130   : > { %v253_v11 = vadd.f32 1e-12, %v252_v10 }
 0x132   : > { %357 = vrsqrt.f32 %v253_v11 }
 0x13f   : > { %v358_v12 = vpop.eup %357 }
 0x140   : > { %v255_v14 = vmul.f32 %v358_v12, %v248_v7 }
 0x142   : > { %v262_v16 = vmul.f32 %v345_v13, %v255_v14 }
 0x144   : > { %v269_v17 = vadd.f32 %v346_v15, %v262_v16 }
 0x146   : > { %v270_v18 = vpack.c.bf16 %v269_v17, %v269_v17 }
 0x148   : > { %271 = vst [vmem:[%s236_s11] sm:$0xf] %v270_v18 }
 0x149 PF: > { %s15_s18 = sadd.s32 1, %s365_s18  }
 0x14a   : > { %p12_p4 = scmp.ge.s32.totalorder %s15_s18, 4  }
 0x14c   :  { %14 = sbr.rel (!%p12_p4) target bundleno = 1 (0x1), region = 73 }

// kernel: scibert_forward.13
= control target key start
LH: loop header
LB: loop body
LE: loop exit
PB: predicated region body
PF: predicated region fallthrough
CT: control target
= control target key end

     0   :  { %v453_v0 = vmov 0.0   ;;  %vm454_vm0 = vmmov 0   ;;  %v455_v3 = vmov 0   ;;  %v306_v27 = vlaneseq  ;;  %s566_s1 = inlined_call_operand.vmem [shape: bf16[128,384], index: 1, kind: input, shape index: {}]   ;;  %s567_s0 = inlined_call_operand.vmem [shape: bf16[16,128], index: 0, kind: input, shape index: {}]   ;;  %s568_s2 = inlined_call_operand.vmem [shape: f32[1,384], index: 2, kind: input, shape index: {}]   ;;  %s569_s3 = inlined_call_operand.vmem [shape: bf16[16,384], index: 3, kind: output, shape index: {}]  }
   0x1   :  { %397 = vmatprep.subr.bf16.mxu1 %v453_v0  ;;  %v420_v1 = vld [vmem:[%s566_s1 + $0xac] ss:$12 sps:$4 sm:$0xff]   ;;  %413 = vmatprep.mubr.msk.bf16.mxu1 %vm454_vm0, %v453_v0  ;;  %v422_v2 = vld [vmem:[%s566_s1 + $0xb0] ss:$12 sps:$4 sm:$0xff]   ;;  %v423_v4 = vld [vmem:[%s566_s1 + $0xa8] ss:$12 sps:$4 sm:$0xff]  }
   0x2   :  { %231 = vmatprep.mubr.bf16.mxu0 %v455_v3  ;;  %199 = vmatprep.subr.bf16.mxu0 %v420_v1  ;;  %v424_v5 = vld [vmem:[%s566_s1 + $0x94] ss:$12 sps:$4 sm:$0xff]   ;;  %v426_v6 = vld [vmem:[%s566_s1 + $0x98] ss:$12 sps:$4 sm:$0xff]   ;;  %v427_v7 = vld [vmem:[%s566_s1 + $0x90] ss:$12 sps:$4 sm:$0xff]  }
   0x3   :  { %398 = vmatpush3.bf16.msra.mxu1 %v422_v2  ;;  %200 = vmatpush1.bf16.msra.mxu0 %v423_v4  ;;  %v428_v8 = vld [vmem:[%s566_s1 + $0x7c] ss:$12 sps:$4 sm:$0xff]   ;;  %v430_v9 = vld [vmem:[%s566_s1 + $0x80] ss:$12 sps:$4 sm:$0xff]   ;;  %v431_v10 = vld [vmem:[%s566_s1 + $0x78] ss:$12 sps:$4 sm:$0xff]  }
   0x4   :  { %399 = vmatprep.subr.bf16.mxu1 %v453_v0  ;;  %201 = vmatprep.subr.bf16.mxu0 %v424_v5  ;;  %v432_v11 = vld [vmem:[%s566_s1 + $0x64] ss:$12 sps:$4 sm:$0xff]   ;;  %v434_v12 = vld [vmem:[%s566_s1 + $0x68] ss:$12 sps:$4 sm:$0xff]   ;;  %v435_v13 = vld [vmem:[%s566_s1 + $0x60] ss:$12 sps:$4 sm:$0xff]  }
   0x5   :  { %v436_v14 = vld [vmem:[%s566_s1 + $0x4c] ss:$12 sps:$4 sm:$0xff]   ;;  %v438_v15 = vld [vmem:[%s566_s1 + $0x50] ss:$12 sps:$4 sm:$0xff]   ;;  %v439_v16 = vld [vmem:[%s566_s1 + $0x48] ss:$12 sps:$4 sm:$0xff]  }
   0x6   :  { %v440_v17 = vld [vmem:[%s566_s1 + $0x34] ss:$12 sps:$4 sm:$0xff]   ;;  %v442_v18 = vld [vmem:[%s566_s1 + $0x38] ss:$12 sps:$4 sm:$0xff]   ;;  %v443_v19 = vld [vmem:[%s566_s1 + $0x30] ss:$12 sps:$4 sm:$0xff]  }
   0x7   :  { %400 = vmatpush3.bf16.msra.mxu1 %v426_v6  ;;  %202 = vmatpush1.bf16.msra.mxu0 %v427_v7  ;;  %v444_v20 = vld [vmem:[%s566_s1 + $0x1c] ss:$12 sps:$4 sm:$0xff]   ;;  %v446_v21 = vld [vmem:[%s566_s1 + $0x20] ss:$12 sps:$4 sm:$0xff]   ;;  %v447_v22 = vld [vmem:[%s566_s1 + $0x18] ss:$12 sps:$4 sm:$0xff]  }
   0x8   :  { %401 = vmatprep.subr.bf16.mxu1 %v453_v0  ;;  %203 = vmatprep.subr.bf16.mxu0 %v428_v8  ;;  %v448_v23 = vld [vmem:[%s566_s1 + $0x4] ss:$12 sps:$4 sm:$0xff]   ;;  %v450_v24 = vld [vmem:[%s566_s1 + $0x8] ss:$12 sps:$4 sm:$0xff]   ;;  %v451_v25 = vld [vmem:[%s566_s1] ss:$12 sps:$4 sm:$0xff]  }
   0x9   :  { %v452_v26 = vld [vmem:[%s567_s0] sm:$0xff]   ;;  %v307_v28 = vshrl.u32 %v306_v27, 7 }
   0xa   :  { %v304_v30 = vld [vmem:[%s568_s2] sm:$0x7] }
   0xb   :  { %402 = vmatpush3.bf16.msra.mxu1 %v430_v9  ;;  %204 = vmatpush1.bf16.msra.mxu0 %v431_v10  ;;  %v316_v29 = vsub.s32 2, %v307_v28  ;;  %v308_v31 = vsub.s32 0, %v307_v28  ;;  %v312_v32 = vsub.s32 1, %v307_v28 }
   0xc   :  { %403 = vmatprep.subr.bf16.mxu1 %v453_v0  ;;  %205 = vmatprep.subr.bf16.mxu0 %v432_v11 }
   0xd   :  { %v317_v33 = vrot.slane %v304_v30, %v316_v29  ;;  %v309_v35 = vrot.slane %v304_v30, %v308_v31  ;;  %v313_v36 = vrot.slane %v304_v30, %v312_v32 }
   0xf   :  { %404 = vmatpush3.bf16.msra.mxu1 %v434_v12  ;;  %206 = vmatpush1.bf16.msra.mxu0 %v435_v13 }
  0x10   :  { %405 = vmatprep.subr.bf16.mxu1 %v453_v0  ;;  %207 = vmatprep.subr.bf16.mxu0 %v436_v14 }
  0x13   :  { %406 = vmatpush3.bf16.msra.mxu1 %v438_v15  ;;  %208 = vmatpush1.bf16.msra.mxu0 %v439_v16 }
  0x14   :  { %407 = vmatprep.subr.bf16.mxu1 %v453_v0  ;;  %209 = vmatprep.subr.bf16.mxu0 %v440_v17 }
  0x17   :  { %408 = vmatpush3.bf16.msra.mxu1 %v442_v18  ;;  %210 = vmatpush1.bf16.msra.mxu0 %v443_v19 }
  0x18   :  { %409 = vmatprep.subr.bf16.mxu1 %v453_v0  ;;  %211 = vmatprep.subr.bf16.mxu0 %v444_v20 }
  0x1b   :  { %410 = vmatpush3.bf16.msra.mxu1 %v446_v21  ;;  %212 = vmatpush1.bf16.msra.mxu0 %v447_v22 }
  0x1c   :  { %411 = vmatprep.subr.bf16.mxu1 %v453_v0  ;;  %213 = vmatprep.subr.bf16.mxu0 %v448_v23 }
  0x1f   :  { %412 = vmatpush3.bf16.msra.mxu1 %v450_v24  ;;  %214 = vmatpush1.bf16.msra.mxu0 %v451_v25 }
  0x22   :  { %414 = vmatmul.mubr.bf16.vlgmr.msra.gmra.mxu1 %v452_v26  ;;  %232 = vmatmul.mubr.bf16.vlgmr.msra.gmra.mxu0 %v452_v26 }
  0xe2   :  { %v276_v34 = vpop.f32.mrf.mxu1  ;;  %v233_v38 = vpop.f32.mrf.mxu0 }
  0xe3   :  { %v323_v37 = vadd.f32 %v317_v33, %v276_v34  ;;  %v321_v42 = vadd.f32 %v309_v35, %v233_v38 }
  0xe4   :  { %v415_v39 = vpop.f32.mrf.mxu1  ;;  %v235_v41 = vpop.f32.mrf.mxu0 }
  0xe5   :  { %v385_v40 = vpack.c.bf16 %v323_v37, %v323_v37  ;;  %v322_v43 = vadd.f32 %v313_v36, %v235_v41 }
  0xe6   :  { %v279_v44 = vpop.f32.mrf.mxu1  ;;  %v237_v46 = vpop.f32.mrf.mxu0 }
  0xe7   :  { %348 = vst [vmem:[%s569_s3 + $0x8] sm:$0xf] %v385_v40  ;;  %v326_v45 = vadd.f32 %v317_v33, %v279_v44  ;;  %v384_v47 = vpack.c.bf16 %v322_v43, %v321_v42  ;;  %v324_v51 = vadd.f32 %v309_v35, %v237_v46 }
  0xe8   :  { %v416_v48 = vpop.f32.mrf.mxu1  ;;  %v239_v50 = vpop.f32.mrf.mxu0 }
  0xe9   :  { %v387_v49 = vpack.c.bf16 %v326_v45, %v326_v45  ;;  %347 = vst [vmem:[%s569_s3] sm:$0xff] %v384_v47  ;;  %v325_v52 = vadd.f32 %v313_v36, %v239_v50 }
  0xeb   :  { %350 = vst [vmem:[%s569_s3 + $0x14] sm:$0xf] %v387_v49  ;;  %v386_v53 = vpack.c.bf16 %v325_v52, %v324_v51 }
  0xed   :  { %349 = vst [vmem:[%s569_s3 + $0xc] sm:$0xff] %v386_v53 }

// kernel: scibert_forward.14
= control target key start
LH: loop header
LB: loop body
LE: loop exit
PB: predicated region body
PF: predicated region fallthrough
CT: control target
= control target key end

     0   :  { %s806_s15 = smov 0   ;;  %s808_s16 = smov 0   ;;  %s874_s0 = inlined_call_operand.vmem [shape: bf16[2,8,384], index: 0, kind: input, shape index: {}, may-alias: {0,1,2}]   ;;  %s875_s1 = inlined_call_operand.vmem [shape: bf16[2,8,384], index: 1, kind: input, shape index: {}, may-alias: {0,1,2}]   ;;  %s876_s2 = inlined_call_operand.vmem [shape: bf16[2,8,384], index: 2, kind: input, shape index: {}, may-alias: {0,1,2}]   ;;  %s877_s3 = inlined_call_operand.vmem [shape: f32[2,1,8], index: 3, kind: input, shape index: {}]   ;;  %s878_s4 = inlined_call_operand.vmem [shape: bf16[2,8,128], index: 4, kind: output, shape index: {}]  }
   0x1   :  { %s810_s17 = smov 0  }
   0x2 LB: > { %s26_s18 = sadd.s32 1, %s772_s16  ;;  %p666_p0 = scmp.ge.s32.totalorder %s776_s17, 1  ;;  %s776_s17 = sphi %s810_s17, %s14_s17   ;;  %s772_s16 = sphi %s808_s16, %s880_s16   ;;  %s768_s15 = sphi %s806_s15, %s879_s15  }
   0x3   : > { %p28_p1 = scmp.ge.s32.totalorder %s26_s18, 2  ;;  %p212_p2 = scmp.lt.s32.totalorder %s776_s17, 3 }
   0x5   : > { %s882_s18 = smov (%p28_p1, %s26_s18), 0  ;;  %p213_p3 = pnand %p666_p0, %p212_p2 }
   0x6   : > { %p259_p4 = scmp.lt.s32.totalorder (!%p213_p3), %s768_s15, 1  ;;  %s780_s26 = smov (!%p213_p3), 64  }
   0x7   : > { %216 = sbr.rel (%p213_p3) target bundleno = 1062 (0x426), region = 36 }
   0xc   : > { %v778_v0 = vmov 0.0   ;;  %vm779_vm0 = vmmov 0   ;;  %s884_s15 = smov (!%p259_p4, %s768_s15), 1  ;;  %vm301_vm1 = vcmask 523264   ;;  %vm348_vm2 = vcmask 64512  }
   0xd   : > { %691 = vmatprep.subr.bf16.mxu0 %v778_v0  ;;  %693 = vmatprep.mubr.msk.bf16.mxu0 %vm779_vm0, %v778_v0  ;;  %s715_s19 = smul.u32 12, %s884_s15  ;;  %s282_s29 = scalar_lea.vmem %s877_s3, %s884_s15  ;;  %vm363_vm3 = vcmask 1043456   ;;  %vm532_vm4 = vcmask 1048064  }
   0xe   : > { %697 = vmatprep.subr.bf16.mxu1 %v778_v0  ;;  %699 = vmatprep.mubr.msk.bf16.mxu1 %vm779_vm0, %v778_v0  ;;  %v673_v5 = vld [vmem:[%s282_s29] ss:$0 sm:$0xff]  ;;  %s670_s7 = sshll.u32 %s884_s15, 2 }
   0xf   : > { %s600_s22 = scalar_lea.vmem %s875_s1, %s715_s19  ;;  %s267_s25 = scalar_lea.vmem %s874_s0, %s715_s19 }
  0x10   : > { %v671_v1 = vld [vmem:[%s600_s22 + $0x4] sm:$0xf]  ;;  %v292_v3 = vld [vmem:[%s267_s25] sm:$0xf]  ;;  %s604_s6 = scalar_lea.vmem %s876_s2, %s715_s19  ;;  %s289_s10 = scalar_lea.vmem %s878_s4, %s670_s7 }
  0x11   : > { %v306_v2 = vsel %vm301_vm1, %v671_v1, 0  ;;  %v676_v4 = vcombine.low %v292_v3, %v292_v3  ;;  %v672_v12 = vld [vmem:[%s604_s6 + $0x8] sm:$0xf]  ;;  %v677_v14 = vcombine.low %v671_v1, %v671_v1 }
  0x12   : > { %692 = vmatpush3.bf16.xpose.msra.mxu0 %v306_v2  ;;  %v365_v13 = vsel %vm363_vm3, %v672_v12, 0  ;;  %v679_v15 = vcombine.low %v672_v12, %v672_v12 }
  0x13   : > { %709 = vmatprep.subr.bf16.mxu0 %v778_v0  ;;  %412 = vrot.lane.b32.xlu1 %v676_v4, %s780_s26 }
  0x14   : > { %698 = vmatpush3.bf16.msra.mxu1 %v365_v13 }
  0x15   : > { %703 = vmatprep.subr.bf16.mxu1 %v778_v0 }
  0x19   : > { %694 = vmatmul.mubr.msk.bf16.vlgmr.msra.gmra.mxu0 %vm301_vm1, %v292_v3 }
  0x1a   : > { %711 = vmatprep.mubr.msk.bf16.mxu0 %vm779_vm0, %v778_v0 }
  0x85   : > { %v413_v23 = vpop.permute.xlu1 %412 }
  0xd9   : > { %v342_v6 = vpop.f32.mrf.mxu0 }
  0xda   : > { %v343_v7 = vadd.f32 %v673_v5, %v342_v6 }
  0xdb   : > { %v695_v8 = vpop.f32.mrf.mxu0 }
  0xdc   : > { %v349_v9 = vsel %vm348_vm2, %v343_v7, -inf }
  0xdd   : > { %350 = vmax.xlane.f32.xlu0 %v349_v9  ;;  %v345_v10 = vpop.f32.mrf.mxu0 }
  0xdf   : > { %v696_v11 = vpop.f32.mrf.mxu0 }
  0xf3   : > { %417 = vrot.lane.b32.xlu0 %v677_v14, %s780_s26 }
  0xf7   : > { %479 = vrot.lane.b32.xlu0 %v679_v15, %s780_s26 }
 0x166   : > { %v351_v16 = vpop.xlane.xlu0 %350 }
 0x167   : > { %v352_v17 = vsub.f32 %v343_v7, %v351_v16 }
 0x169   : > { %v353_v18 = vmul.f32 1.442695, %v352_v17 }
 0x16a   : > { %v418_v19 = vpop.permute.xlu0 %417 }
 0x16b   : > { %746 = vpow2.f32 %v353_v18  ;;  %v423_v21 = vsel %vm301_vm1, %v418_v19, 0 }
 0x16e   : > { %v480_v35 = vpop.permute.xlu0 %479 }
 0x16f   : > { %v485_v36 = vsel %vm363_vm3, %v480_v35, 0 }
 0x170   : > { %710 = vmatpush3.bf16.msra.mxu0 %v485_v36 }
 0x178   : > { %v747_v20 = vpop.eup %746 }
 0x179   : > { %v359_v22 = vpack.c.bf16 %v747_v20, %v747_v20  ;;  %v355_v34 = vsel %vm348_vm2, %v747_v20, 0.0 }
 0x17b   : > { %700 = vmatmul.mubr.msk.bf16.vlgmr.msra.gmra.mxu1 %vm348_vm2, %v359_v22 }
 0x17c   : > { %704 = vmatpush3.bf16.xpose.msra.mxu1 %v423_v21  ;;  %705 = vmatprep.mubr.msk.bf16.mxu1 %vm779_vm0, %v778_v0 }
 0x183   : > { %706 = vmatmul.mubr.msk.bf16.vlgmr.msra.gmra.mxu1 %vm301_vm1, %v413_v23 }
 0x23b   : > { %v401_v24 = vpop.f32.mrf.mxu1 }
 0x23d   : > { %v701_v25 = vpop.f32.mrf.mxu1 }
 0x23f   : > { %v404_v26 = vpop.f32.mrf.mxu1 }
 0x241   : > { %v702_v27 = vpop.f32.mrf.mxu1 }
 0x243   : > { %v459_v28 = vpop.f32.mrf.mxu1 }
 0x244   : > { %v460_v29 = vadd.f32 %v673_v5, %v459_v28 }
 0x245   : > { %v707_v30 = vpop.f32.mrf.mxu1 }
 0x246   : > { %v465_v31 = vsel %vm348_vm2, %v460_v29, -inf }
 0x247   : > { %466 = vmax.xlane.f32.xlu1 %v465_v31  ;;  %v462_v32 = vpop.f32.mrf.mxu1 }
 0x249   : > { %v708_v33 = vpop.f32.mrf.mxu1 }
 0x24b   : > { %356 = vadd.xlane.f32.xlu1 %v355_v34 }
 0x2d0   : > { %v467_v37 = vpop.xlane.xlu1 %466 }
 0x2d1   : > { %v468_v38 = vsub.f32 %v460_v29, %v467_v37 }
 0x2d3   : > { %v469_v39 = vmul.f32 1.442695, %v468_v38 }
 0x2d4   : > { %v357_v40 = vpop.xlane.xlu1 %356 }
 0x2d5   : > { %748 = vpow2.f32 %v469_v39 }
 0x2d6   : > { %750 = vrcp.f32 %v357_v40 }
 0x2e2   : > { %v749_v41 = vpop.eup %748 }
 0x2e3   : > { %v751_v42 = vpop.eup %750  ;;  %v471_v43 = vsel %vm348_vm2, %v749_v41, 0.0  ;;  %v475_v44 = vpack.c.bf16 %v749_v41, %v749_v41 }
 0x2e4   : > { %472 = vadd.xlane.f32.xlu0 %v471_v43  ;;  %v407_v45 = vmul.f32 %v751_v42, %v401_v24 }
 0x2e5   : > { %712 = vmatmul.mubr.msk.bf16.vlgmr.msra.gmra.mxu0 %vm348_vm2, %v475_v44 }
 0x2e6   : > { %408 = vst.msk [vmem:[#allocation2] sm:$0xff] %vm301_vm1, %v407_v45 }
 0x36d   : > { %v473_v46 = vpop.xlane.xlu0 %472 }
 0x36e   : > { %752 = vrcp.f32 %v473_v46 }
 0x37b   : > { %v753_v47 = vpop.eup %752 }
 0x3a5   : > { %v521_v48 = vpop.f32.mrf.mxu0 }
 0x3a6   : > { %v527_v49 = vmul.f32 %v753_v47, %v521_v48 }
 0x3a7   : > { %v713_v50 = vpop.f32.mrf.mxu0 }
 0x3a8   : > { %529 = vrot.lane.b32.xlu1 %v527_v49, %s780_s26 }
 0x3a9   : > { %v524_v51 = vpop.f32.mrf.mxu0 }
 0x3ab   : > { %v714_v52 = vpop.f32.mrf.mxu0 }
 0x41a   : > { %v530_v53 = vpop.permute.xlu1 %529 }
 0x41b   : > { %533 = vst.msk [vmem:[#allocation2] sm:$0xff] %vm532_vm4, %v530_v53 }
 0x422   : > { %v534_v54 = vld [vmem:[#allocation2] sm:$0xff] }
 0x423   : > { %v535_v55 = vpack.c.bf16 %v534_v54, %v534_v54 }
 0x425   : > { %536 = vst [vmem:[%s289_s10] sm:$0xf] %v535_v55 }
 0x426 PF: > { %s14_s17 = sadd.s32 1, %s776_s17   ;;  %s879_s15 = smov %s772_s16 }
 0x427   : > { %p11_p5 = scmp.ge.s32.totalorder %s14_s17, 4   ;;  %s880_s16 = smov %s882_s18 }
 0x429   :  { %13 = sbr.rel (!%p11_p5) target bundleno = 2 (0x2), region = 75 }

// kernel: scibert_forward.15
= control target key start
LH: loop header
LB: loop body
LE: loop exit
PB: predicated region body
PF: predicated region fallthrough
CT: control target
= control target key end

     0   :  { %v293_v0 = vmov 0.0   ;;  %vm294_vm0 = vmmov 0   ;;  %s372_s1 = inlined_call_operand.vmem [shape: bf16[128,128], index: 1, kind: input, shape index: {}]   ;;  %s373_s0 = inlined_call_operand.vmem [shape: bf16[16,128], index: 0, kind: input, shape index: {}]   ;;  %s374_s3 = inlined_call_operand.vmem [shape: bf16[16,128], index: 3, kind: input, shape index: {}]   ;;  %s375_s2 = inlined_call_operand.vmem [shape: f32[1,128], index: 2, kind: input, shape index: {}]   ;;  %s376_s4 = inlined_call_operand.vmem [shape: f32[1,128], index: 4, kind: input, shape index: {}]   ;;  %s377_s5 = inlined_call_operand.vmem [shape: f32[1,128], index: 5, kind: input, shape index: {}]   ;;  %s378_s6 = inlined_call_operand.vmem [shape: bf16[16,128], index: 6, kind: output, shape index: {}]  }
   0x1   :  { %258 = vmatprep.subr.bf16.mxu0 %v293_v0  ;;  %v280_v1 = vld [vmem:[%s372_s1 + $0x38] sm:$0xff]   ;;  %274 = vmatprep.mubr.msk.bf16.mxu0 %vm294_vm0, %v293_v0  ;;  %v281_v2 = vld [vmem:[%s372_s1 + $0x30] sm:$0xff]   ;;  %v282_v3 = vld [vmem:[%s372_s1 + $0x28] sm:$0xff]  }
   0x2   :  { %259 = vmatpush3.bf16.msra.mxu0 %v280_v1  ;;  %v283_v4 = vld [vmem:[%s372_s1 + $0x20] sm:$0xff]   ;;  %v284_v5 = vld [vmem:[%s372_s1 + $0x18] sm:$0xff]   ;;  %v285_v6 = vld [vmem:[%s372_s1 + $0x10] sm:$0xff]  }
   0x3   :  { %260 = vmatprep.subr.bf16.mxu0 %v293_v0  ;;  %v286_v7 = vld [vmem:[%s372_s1 + $0x8] sm:$0xff]   ;;  %v287_v8 = vld [vmem:[%s372_s1] sm:$0xff]  }
   0x4   :  { %v288_v9 = vld [vmem:[%s373_s0] sm:$0xff]  }
   0x5   :  { %v241_v10 = vld [vmem:[%s374_s3] sm:$0xff]  }
   0x6   :  { %261 = vmatpush3.bf16.msra.mxu0 %v281_v2  ;;  %v233_v11 = vld [vmem:[%s375_s2] ss:$0 sm:$0xff]  ;;  %v242_v12 = vunpack.c.l.bf16 %v241_v10  ;;  %v243_v17 = vunpack.c.h.bf16 %v241_v10 }
   0x7   :  { %262 = vmatprep.subr.bf16.mxu0 %v293_v0  ;;  %v234_v38 = vld [vmem:[%s376_s4] ss:$0 sm:$0xff] }
   0x8   :  { %v235_v42 = vld [vmem:[%s377_s5] ss:$0 sm:$0xff] }
   0xa   :  { %263 = vmatpush3.bf16.msra.mxu0 %v282_v3 }
   0xb   :  { %264 = vmatprep.subr.bf16.mxu0 %v293_v0 }
   0xe   :  { %265 = vmatpush3.bf16.msra.mxu0 %v283_v4 }
   0xf   :  { %266 = vmatprep.subr.bf16.mxu0 %v293_v0 }
  0x12   :  { %267 = vmatpush3.bf16.msra.mxu0 %v284_v5 }
  0x13   :  { %268 = vmatprep.subr.bf16.mxu0 %v293_v0 }
  0x16   :  { %269 = vmatpush3.bf16.msra.mxu0 %v285_v6 }
  0x17   :  { %270 = vmatprep.subr.bf16.mxu0 %v293_v0 }
  0x1a   :  { %271 = vmatpush3.bf16.msra.mxu0 %v286_v7 }
  0x1b   :  { %272 = vmatprep.subr.bf16.mxu0 %v293_v0 }
  0x1e   :  { %273 = vmatpush3.bf16.msra.mxu0 %v287_v8 }
  0x21   :  { %275 = vmatmul.mubr.bf16.vlgmr.msra.gmra.mxu0 %v288_v9 }
  0xe1   :  { %v138_v13 = vpop.f32.mrf.mxu0 }
  0xe2   :  { %v161_v14 = vadd.f32 %v233_v11, %v138_v13 }
  0xe3   :  { %v276_v15 = vpop.f32.mrf.mxu0 }
  0xe4   :  { %v167_v16 = vadd.f32 %v242_v12, %v161_v14 }
  0xe5   :  { %v141_v18 = vpop.f32.mrf.mxu0 }
  0xe6   :  { %v162_v19 = vadd.f32 %v233_v11, %v141_v18  ;;  %171 = vadd.xlane.f32.xlu0 %v167_v16 }
  0xe7   :  { %v277_v20 = vpop.f32.mrf.mxu0 }
  0xe8   :  { %v168_v21 = vadd.f32 %v243_v17, %v162_v19 }
  0xea   :  { %173 = vadd.xlane.f32.xlu0 %v168_v21 }
 0x16f   :  { %v172_v22 = vpop.xlane.xlu0 %171 }
 0x170   :  { %v176_v23 = vmul.f32 0.0078125, %v172_v22 }
 0x172   :  { %v178_v24 = vsub.f32 %v167_v16, %v176_v23 }
 0x173   :  { %v174_v25 = vpop.xlane.xlu0 %173 }
 0x174   :  { %v177_v26 = vmul.f32 0.0078125, %v174_v25  ;;  %v180_v27 = vmul.f32 %v178_v24, %v178_v24 }
 0x176   :  { %v179_v28 = vsub.f32 %v168_v21, %v177_v26  ;;  %182 = vadd.xlane.f32.xlu1 %v180_v27 }
 0x178   :  { %v181_v29 = vmul.f32 %v179_v28, %v179_v28 }
 0x17a   :  { %184 = vadd.xlane.f32.xlu1 %v181_v29 }
 0x1ff   :  { %v183_v30 = vpop.xlane.xlu1 %182 }
 0x200   :  { %v186_v31 = vmul.f32 0.0078125, %v183_v30 }
 0x202   :  { %v188_v32 = vadd.f32 1e-12, %v186_v31 }
 0x203   :  { %v185_v33 = vpop.xlane.xlu1 %184 }
 0x204   :  { %289 = vrsqrt.f32 %v188_v32  ;;  %v187_v34 = vmul.f32 0.0078125, %v185_v33 }
 0x206   :  { %v189_v35 = vadd.f32 1e-12, %v187_v34 }
 0x208   :  { %291 = vrsqrt.f32 %v189_v35 }
 0x211   :  { %v290_v36 = vpop.eup %289 }
 0x212   :  { %v192_v37 = vmul.f32 %v290_v36, %v178_v24 }
 0x214   :  { %v200_v40 = vmul.f32 %v234_v38, %v192_v37 }
 0x215   :  { %v292_v39 = vpop.eup %291 }
 0x216   :  { %v193_v41 = vmul.f32 %v292_v39, %v179_v28  ;;  %v208_v44 = vadd.f32 %v235_v42, %v200_v40 }
 0x218   :  { %v201_v43 = vmul.f32 %v234_v38, %v193_v41 }
 0x21a   :  { %v209_v45 = vadd.f32 %v235_v42, %v201_v43 }
 0x21c   :  { %v247_v46 = vpack.c.bf16 %v209_v45, %v208_v44 }
 0x21e   :  { %248 = vst [vmem:[%s378_s6] sm:$0xff] %v247_v46  }

// kernel: scibert_forward.17
= control target key start
LH: loop header
LB: loop body
LE: loop exit
PB: predicated region body
PF: predicated region fallthrough
CT: control target
= control target key end

     0   :  { %s475_s1 = inlined_call_operand.vmem [shape: bf16[256,128], index: 1, kind: input, shape index: {}]   ;;  %s476_s0 = inlined_call_operand.vmem [shape: bf16[16,256], index: 0, kind: input, shape index: {}]   ;;  %s477_s3 = inlined_call_operand.vmem [shape: bf16[16,128], index: 3, kind: input, shape index: {}]   ;;  %s478_s2 = inlined_call_operand.vmem [shape: f32[1,128], index: 2, kind: input, shape index: {}]   ;;  %s479_s4 = inlined_call_operand.vmem [shape: f32[1,128], index: 4, kind: input, shape index: {}]   ;;  %s480_s5 = inlined_call_operand.vmem [shape: f32[1,128], index: 5, kind: input, shape index: {}]   ;;  %s481_s6 = inlined_call_operand.vmem [shape: bf16[16,128], index: 6, kind: output, shape index: {}]  }
   0x1   :  { %v348_v0 = vld [vmem:[%s475_s1 + $0x78] sm:$0xff]   ;;  %v350_v2 = vld [vmem:[%s475_s1 + $0x70] sm:$0xff]   ;;  %v352_v4 = vld [vmem:[%s475_s1 + $0x68] sm:$0xff]  }
   0x2   :  { %v349_v1 = vld [vmem:[%s475_s1 + $0x38] sm:$0xff]   ;;  %326 = vmatprep.subr.bf16.mxu0 %v348_v0  ;;  %v351_v3 = vld [vmem:[%s475_s1 + $0x30] sm:$0xff]   ;;  %v353_v5 = vld [vmem:[%s475_s1 + $0x28] sm:$0xff]  }
   0x3   :  { %327 = vmatpush3.bf16.msra.mxu0 %v349_v1  ;;  %v354_v6 = vld [vmem:[%s475_s1 + $0x60] sm:$0xff]   ;;  %v356_v8 = vld [vmem:[%s475_s1 + $0x58] sm:$0xff]   ;;  %v358_v10 = vld [vmem:[%s475_s1 + $0x50] sm:$0xff]  }
   0x4   :  { %328 = vmatprep.subr.bf16.mxu0 %v350_v2  ;;  %v355_v7 = vld [vmem:[%s475_s1 + $0x20] sm:$0xff]   ;;  %v357_v9 = vld [vmem:[%s475_s1 + $0x18] sm:$0xff]   ;;  %v359_v12 = vld [vmem:[%s475_s1 + $0x10] sm:$0xff]  }
   0x5   :  { %v366_v11 = vld [vmem:[%s476_s0 + $0x4] ss:$8 sps:$4 sm:$0xff]   ;;  %v364_v17 = vld [vmem:[%s476_s0] ss:$8 sps:$4 sm:$0xff]  }
   0x6   :  { %204 = vmatprep.mubr.bf16.mxu0 %v366_v11  ;;  %v360_v13 = vld [vmem:[%s475_s1 + $0x48] sm:$0xff]   ;;  %v362_v15 = vld [vmem:[%s475_s1 + $0x40] sm:$0xff]  }
   0x7   :  { %329 = vmatpush3.bf16.msra.mxu0 %v351_v3  ;;  %v361_v14 = vld [vmem:[%s475_s1 + $0x8] sm:$0xff]   ;;  %v363_v16 = vld [vmem:[%s475_s1] sm:$0xff]  }
   0x8   :  { %330 = vmatprep.subr.bf16.mxu0 %v352_v4  ;;  %v318_v19 = vld [vmem:[%s477_s3] sm:$0xff]  }
   0x9   :  { %v310_v21 = vld [vmem:[%s478_s2] ss:$0 sm:$0xff]  ;;  %v319_v23 = vunpack.c.l.bf16 %v318_v19  ;;  %v320_v29 = vunpack.c.h.bf16 %v318_v19 }
   0xa   :  { %v311_v48 = vld [vmem:[%s479_s4] ss:$0 sm:$0xff] }
   0xb   :  { %331 = vmatpush3.bf16.msra.mxu0 %v353_v5  ;;  %v312_v52 = vld [vmem:[%s480_s5] ss:$0 sm:$0xff] }
   0xc   :  { %332 = vmatprep.subr.bf16.mxu0 %v354_v6 }
   0xf   :  { %333 = vmatpush3.bf16.msra.mxu0 %v355_v7 }
  0x10   :  { %334 = vmatprep.subr.bf16.mxu0 %v356_v8 }
  0x13   :  { %335 = vmatpush3.bf16.msra.mxu0 %v357_v9 }
  0x14   :  { %336 = vmatprep.subr.bf16.mxu0 %v358_v10 }
  0x17   :  { %337 = vmatpush3.bf16.msra.mxu0 %v359_v12 }
  0x18   :  { %338 = vmatprep.subr.bf16.mxu0 %v360_v13 }
  0x1b   :  { %339 = vmatpush3.bf16.msra.mxu0 %v361_v14 }
  0x1c   :  { %340 = vmatprep.subr.bf16.mxu0 %v362_v15 }
  0x1f   :  { %341 = vmatpush3.bf16.msra.mxu0 %v363_v16 }
  0x22   :  { %205 = vmatmul.mubr.bf16.vlgmr.msra.gmra.mxu0 %v364_v17 }
  0xe2   :  { %v342_v18 = vpop.f32.mrf.mxu0 }
  0xe4   :  { %v343_v20 = vpop.f32.mrf.mxu0 }
  0xe5   :  { %v344_v22 = vadd.f32 %v343_v20, %v342_v18 }
  0xe6   :  { %v345_v24 = vpop.f32.mrf.mxu0 }
  0xe7   :  { %v229_v25 = vadd.f32 %v344_v22, %v310_v21 }
  0xe8   :  { %v346_v26 = vpop.f32.mrf.mxu0 }
  0xe9   :  { %v347_v27 = vadd.f32 %v346_v26, %v345_v24  ;;  %v235_v28 = vadd.f32 %v319_v23, %v229_v25 }
  0xeb   :  { %v230_v30 = vadd.f32 %v347_v27, %v310_v21  ;;  %239 = vadd.xlane.f32.xlu0 %v235_v28 }
  0xed   :  { %v236_v31 = vadd.f32 %v320_v29, %v230_v30 }
  0xef   :  { %241 = vadd.xlane.f32.xlu0 %v236_v31 }
 0x174   :  { %v240_v32 = vpop.xlane.xlu0 %239 }
 0x175   :  { %v244_v33 = vmul.f32 0.0078125, %v240_v32 }
 0x177   :  { %v246_v34 = vsub.f32 %v235_v28, %v244_v33 }
 0x178   :  { %v242_v35 = vpop.xlane.xlu0 %241 }
 0x179   :  { %v245_v36 = vmul.f32 0.0078125, %v242_v35  ;;  %v248_v37 = vmul.f32 %v246_v34, %v246_v34 }
 0x17b   :  { %v247_v38 = vsub.f32 %v236_v31, %v245_v36  ;;  %250 = vadd.xlane.f32.xlu1 %v248_v37 }
 0x17d   :  { %v249_v39 = vmul.f32 %v247_v38, %v247_v38 }
 0x17f   :  { %252 = vadd.xlane.f32.xlu1 %v249_v39 }
 0x204   :  { %v251_v40 = vpop.xlane.xlu1 %250 }
 0x205   :  { %v254_v41 = vmul.f32 0.0078125, %v251_v40 }
 0x207   :  { %v256_v42 = vadd.f32 1e-12, %v254_v41 }
 0x208   :  { %v253_v43 = vpop.xlane.xlu1 %252 }
 0x209   :  { %367 = vrsqrt.f32 %v256_v42  ;;  %v255_v44 = vmul.f32 0.0078125, %v253_v43 }
 0x20b   :  { %v257_v45 = vadd.f32 1e-12, %v255_v44 }
 0x20d   :  { %369 = vrsqrt.f32 %v257_v45 }
 0x216   :  { %v368_v46 = vpop.eup %367 }
 0x217   :  { %v260_v47 = vmul.f32 %v368_v46, %v246_v34 }
 0x219   :  { %v268_v50 = vmul.f32 %v311_v48, %v260_v47 }
 0x21a   :  { %v370_v49 = vpop.eup %369 }
 0x21b   :  { %v261_v51 = vmul.f32 %v370_v49, %v247_v38  ;;  %v276_v54 = vadd.f32 %v312_v52, %v268_v50 }
 0x21d   :  { %v269_v53 = vmul.f32 %v311_v48, %v261_v51 }
 0x21f   :  { %v277_v55 = vadd.f32 %v312_v52, %v269_v53 }
 0x221   :  { %v324_v56 = vpack.c.bf16 %v277_v55, %v276_v54 }
 0x223   :  { %325 = vst [vmem:[%s481_s6] sm:$0xff] %v324_v56  }

// kernel: scibert_forward.23
= control target key start
LH: loop header
LB: loop body
LE: loop exit
PB: predicated region body
PF: predicated region fallthrough
CT: control target
= control target key end

     0   :  { %14 = vsyncpa [#allocation4], 0  ;;  %s928_s0 = inlined_call_operand.vmem [shape: bf16[2,8,128], index: 0, kind: input, shape index: {}]   ;;  %s929_s1 = inlined_call_operand.vmem [shape: bf16[128,32], index: 1, kind: input, shape index: {}]   ;;  %s930_s2 = inlined_call_operand.vmem [shape: f32[1,32], index: 2, kind: input, shape index: {}]   ;;  %s931_s3 = inlined_call_operand.vmem [shape: bf16[32,4], index: 3, kind: input, shape index: {}]   ;;  %s932_s4 = inlined_call_operand.vmem [shape: f32[1,4], index: 4, kind: input, shape index: {}]   ;;  %s933_s5 = inlined_call_operand.vmem [shape: f32[2,4], index: 5, kind: input, shape index: {}]   ;;  %s934_s6 = inlined_call_operand.vmem [shape: f32[2,1], index: 6, kind: input, shape index: {}]   ;;  %s935_s7 = inlined_call_operand.hbm [shape: f32[1,1], index: 7, kind: output, shape index: {0}]   ;;  %s936_s8 = inlined_call_operand.hbm [shape: f32[2,4], index: 8, kind: output, shape index: {1}]  }
   0x1   :  { %15 = vsyncpa [#allocation6], 0  ;;  %s839_s27 = smov 0  }
   0x2 LB: > { %s845_s28 = sadd.s32 4294967295, %s788_s27   ;;  %p612_p0 = scmp.ge.s32.totalorder %s788_s27, 1  ;;  %s788_s27 = sphi %s839_s27, %s21_s27  }
   0x3   : > { %p256_p1 = scmp.lt.s32.totalorder %s788_s27, 3 }
   0x5   : > { %p257_p2 = pnand %p612_p0, %p256_p1 }
   0x6   : > { %p284_p3 = scmp.lt.s32.totalorder (!%p257_p2), %s845_s28, 1  ;;  %s635_s12 = scalar_lea.vmem (!%p257_p2), [#allocation2], %s788_s27 }
   0x7   : > { %260 = sbr.rel (%p257_p2) target bundleno = 1096 (0x448), region = 48  ;;  %p615_p4 = scmp.ne.s32.totalorder (!%p257_p2), %s845_s28, 1 }
   0xc   : > { %s285_s29 = scalar_select %p284_p3, %s845_s28, 1 }
   0xe   : > { %s613_s30 = sshll.u32 %s285_s29, 2 }
   0xf   : > { %s287_s11 = scalar_lea.vmem %s928_s0, %s613_s30 }
  0x10   : > { %v289_v0 = vld [vmem:[%s287_s11] sm:$0xf] }
  0x11   : > { %v290_v1 = vunpack.c.l.bf16 %v289_v0 }
  0x13   : > { %v291_v2 = vrot.slane %v290_v1, 4 }
  0x15   : > { %v292_v3 = vadd.f32 %v291_v2, %v290_v1 }
  0x17   : > { %v293_v4 = vrot.slane %v292_v3, 2 }
  0x19   : > { %v294_v5 = vadd.f32 %v293_v4, %v292_v3 }
  0x1b   : > { %v295_v6 = vrot.slane %v294_v5, 1 }
  0x1d   : > { %v296_v7 = vadd.f32 %v295_v6, %v294_v5  ;;  %303 = sbr.rel (%p615_p4) target bundleno = 1068 (0x42c), region = 52 }
  0x1f   : > { %v297_v8 = vmul.f32 0.125, %v296_v7 }
  0x21   : > { %637 = vst [vmem:[%s635_s12 - $0x1] sm:$0x1] %v297_v8 }
  0x22   : > { %v708_v9 = vld [vmem:[%s929_s1 + $0x38] sm:$0xff]   ;;  %v790_v10 = vmov 0.0   ;;  %v709_v11 = vld [vmem:[%s929_s1 + $0x30] sm:$0xff]   ;;  %vm791_vm0 = vmmov 0   ;;  %v710_v12 = vld [vmem:[%s929_s1 + $0x28] sm:$0xff]   ;;  %vm446_vm1 = vcmask 261120  }
  0x23   : > { %650 = vmatprep.subr.bf16.mxu0 %v790_v10  ;;  %670 = vmatprep.subr.bf16.mxu1 %v790_v10  ;;  %v711_v13 = vld [vmem:[%s929_s1 + $0x20] sm:$0xff]   ;;  %v712_v14 = vld [vmem:[%s929_s1 + $0x18] sm:$0xff]   ;;  %v713_v15 = vld [vmem:[%s929_s1 + $0x10] sm:$0xff]   ;;  %vm490_vm2 = vcmask 25600   ;;  %vm512_vm3 = vcmask 1024   ;;  %vm538_vm4 = vcmask 0  }
  0x24   : > { %651 = vmatpush3.bf16.msra.mxu0 %v708_v9  ;;  %666 = vmatprep.mubr.msk.bf16.mxu0 %vm791_vm0, %v790_v10  ;;  %v714_v16 = vld [vmem:[%s929_s1 + $0x8] sm:$0xff]   ;;  %v715_v17 = vld [vmem:[%s929_s1] sm:$0xff]  }
  0x25   : > { %652 = vmatprep.subr.bf16.mxu0 %v790_v10  ;;  %674 = vmatprep.mubr.msk.bf16.mxu1 %vm791_vm0, %v790_v10  ;;  %v716_v20 = vld [vmem:[%s931_s3 + $0x8] sm:$0xff]   ;;  %v717_v21 = vld [vmem:[%s931_s3] sm:$0xff]  }
  0x26   : > { %671 = vmatpush3.bf16.msra.mxu1 %v716_v20  ;;  %v616_v22 = vld [vmem:[%s930_s2] ss:$0 sm:$0xff] }
  0x27   : > { %672 = vmatprep.subr.bf16.mxu1 %v790_v10  ;;  %v625_v34 = vld [vmem:[%s932_s4] ss:$0 sm:$0xff] }
  0x28   : > { %653 = vmatpush3.bf16.msra.mxu0 %v709_v11  ;;  %v304_v18 = vld [vmem:[#allocation2] sm:$0x3] }
  0x29   : > { %654 = vmatprep.subr.bf16.mxu0 %v790_v10  ;;  %v305_v19 = vpack.c.bf16 %v304_v18, %v304_v18  ;;  %v504_v36 = vld [vmem:[%s933_s5] sm:$0x3] }
  0x2a   : > { %673 = vmatpush3.bf16.msra.mxu1 %v717_v21  ;;  %v510_v49 = vld [vmem:[%s934_s6] sm:$0x3] }
  0x2b   : > { %v523_v50 = vsel %vm512_vm3, %v510_v49, 0.0 }
  0x2c   : > { %655 = vmatpush3.bf16.msra.mxu0 %v710_v12 }
  0x2d   : > { %656 = vmatprep.subr.bf16.mxu0 %v790_v10 }
  0x30   : > { %657 = vmatpush3.bf16.msra.mxu0 %v711_v13 }
  0x31   : > { %658 = vmatprep.subr.bf16.mxu0 %v790_v10 }
  0x34   : > { %659 = vmatpush3.bf16.msra.mxu0 %v712_v14 }
  0x35   : > { %660 = vmatprep.subr.bf16.mxu0 %v790_v10 }
  0x38   : > { %661 = vmatpush3.bf16.msra.mxu0 %v713_v15 }
  0x39   : > { %662 = vmatprep.subr.bf16.mxu0 %v790_v10 }
  0x3c   : > { %663 = vmatpush3.bf16.msra.mxu0 %v714_v16 }
  0x3d   : > { %664 = vmatprep.subr.bf16.mxu0 %v790_v10 }
  0x40   : > { %665 = vmatpush3.bf16.msra.mxu0 %v715_v17 }
  0x43   : > { %667 = vmatmul.mubr.bf16.vlgmr.msra.gmra.mxu0 %v305_v19 }
 0x103   : > { %v411_v23 = vpop.f32.mrf.mxu0 }
 0x104   : > { %v412_v24 = vadd.f32 %v616_v22, %v411_v23 }
 0x105   : > { %v668_v25 = vpop.f32.mrf.mxu0 }
 0x106   : > { %v418_v26 = vmul.f32 0.70710677, %v412_v24  ;;  %v417_v30 = vmul.f32 0.5, %v412_v24 }
 0x107   : > { %v414_v27 = vpop.f32.mrf.mxu0 }
 0x108   : > { %718 = verf.f32 %v418_v26 }
 0x109   : > { %v669_v28 = vpop.f32.mrf.mxu0 }
 0x115   : > { %v719_v29 = vpop.eup %718 }
 0x116   : > { %v420_v31 = vadd.f32 1.0, %v719_v29 }
 0x118   : > { %v421_v32 = vmul.f32 %v420_v31, %v417_v30 }
 0x11a   : > { %v422_v33 = vpack.c.bf16 %v421_v32, %v421_v32 }
 0x11c   : > { %675 = vmatmul.mubr.msk.bf16.vlgmr.msra.gmra.mxu1 %vm446_vm1, %v422_v33 }
 0x1dc   : > { %v484_v35 = vpop.f32.mrf.mxu1 }
 0x1dd   : > { %v485_v37 = vadd.f32 %v625_v34, %v484_v35 }
 0x1de   : > { %v676_v38 = vpop.f32.mrf.mxu1 }
 0x1df   : > { %v492_v39 = vsel %vm490_vm2, %v485_v37, -inf  ;;  %491 = vst.msk [vmem:[#allocation5] sm:$0x3] %vm490_vm2, %v485_v37  ;;  %v505_v40 = vmul.f32 %v504_v36, %v485_v37 }
 0x1e0   : > { %493 = vmax.xlane.f32.xlu0 %v492_v39  ;;  %v487_v41 = vpop.f32.mrf.mxu1 }
 0x1e1   : > { %v506_v42 = vsel %vm490_vm2, %v505_v40, 0.0 }
 0x1e2   : > { %507 = vadd.xlane.f32.xlu1 %v506_v42  ;;  %v677_v43 = vpop.f32.mrf.mxu1 }
 0x269   : > { %v494_v44 = vpop.xlane.xlu0 %493 }
 0x26a   : > { %v495_v45 = vsub.f32 %v485_v37, %v494_v44 }
 0x26b   : > { %v508_v55 = vpop.xlane.xlu1 %507 }
 0x26c   : > { %v496_v46 = vmul.f32 1.442695, %v495_v45 }
 0x26e   : > { %720 = vpow2.f32 %v496_v46 }
 0x27b   : > { %v721_v47 = vpop.eup %720 }
 0x27c   : > { %v498_v48 = vsel %vm490_vm2, %v721_v47, 0.0 }
 0x27d   : > { %499 = vadd.xlane.f32.xlu0 %v498_v48 }
 0x281   : > { %524 = vadd.xlane.f32.xlu0 %v523_v50 }
 0x306   : > { %v500_v51 = vpop.xlane.xlu0 %499 }
 0x307   : > { %722 = vlog2.f32 %v500_v51 }
 0x30a   : > { %v525_v59 = vpop.xlane.xlu0 %524 }
 0x30b   : > { %v526_v60 = vrot.slane %v525_v59, 4 }
 0x30d   : > { %v527_v61 = vadd.f32 %v526_v60, %v525_v59 }
 0x30f   : > { %v528_v62 = vrot.slane %v527_v61, 2 }
 0x311   : > { %v529_v2 = vadd.f32 %v528_v62, %v527_v61 }
 0x313   : > { %v530_v5 = vrot.slane %v529_v2, 1 }
 0x314   : > { %v723_v52 = vpop.eup %722 }
 0x315   : > { %v502_v53 = vmul.f32 0.6931472, %v723_v52  ;;  %v531_v8 = vadd.f32 %v530_v5, %v529_v2 }
 0x317   : > { %v503_v54 = vadd.f32 %v502_v53, %v494_v44 }
 0x319   : > { %v509_v56 = vsub.f32 %v503_v54, %v508_v55 }
 0x31b   : > { %v511_v57 = vmul.f32 %v510_v49, %v509_v56 }
 0x31d   : > { %v513_v58 = vsel %vm512_vm3, %v511_v57, 0.0 }
 0x31e   : > { %514 = vadd.xlane.f32.xlu1 %v513_v58 }
 0x3a7   : > { %v515_v63 = vpop.xlane.xlu1 %514 }
 0x3a8   : > { %v516_v0 = vrot.slane %v515_v63, 4 }
 0x3aa   : > { %v517_v1 = vadd.f32 %v516_v0, %v515_v63 }
 0x3ac   : > { %v518_v3 = vrot.slane %v517_v1, 2 }
 0x3ae   : > { %v519_v4 = vadd.f32 %v518_v3, %v517_v1 }
 0x3b0   : > { %v520_v6 = vrot.slane %v519_v4, 1 }
 0x3b2   : > { %v521_v7 = vadd.f32 %v520_v6, %v519_v4 }
 0x3b4   : > { %678 = vpush %v521_v7 }
 0x3b5   : > { %680 = vpush %v531_v8 }
 0x3e5   : > { %s679_s21 = spop %678 }
 0x3e6   : > { %s681_s22 = spop %680 }
 0x3e7   : > { %v533_v9 = vstv %s681_s22 }
 0x3e8   : > { %724 = vrcp.f32 %v533_v9 }
 0x3f5   : > { %v725_v10 = vpop.eup %724 }
 0x3f6   : > { %682 = vpush %v725_v10 }
 0x427   : > { %s683_s23 = spop %682 }
 0x428   : > { %s536_s24 = smul.f32 %s683_s23, %s679_s21 }
 0x42a   : > { %v537_v11 = vstv %s536_s24 }
 0x42b   : > { %539 = vst.msk [vmem:[#allocation3] sm:$0x1] %vm538_vm4, %v537_v11 }
 0x42c PF: > { %p692_p5 = scmp.eq.s32.totalorder %s845_s28, 1  ;;  %s792_s25 = smov [#allocation3]  }
 0x42d   : > { %s547_s26 = sshll.u32 %s792_s25, 4  ;;  %s793_s29 = smov [#allocation5]   ;;  %s548_s26 = int_to_ptr.vmem [resolvable:$true] %s547_s26 }
 0x42e   : > { %s558_s30 = sshll.u32 %s793_s29, 4  ;;  %s726_s9 = scalar_lea.vmem %s548_s26, 16  ;;  %s559_s30 = int_to_ptr.vmem [resolvable:$true] %s558_s30 }
 0x42f   : > { %p727_p6 = scmp.ne.s32.totalorder %s548_s26, %s726_s9  ;;  %s732_s10 = scalar_lea.vmem %s548_s26, 32 }
 0x430   : > { %p733_p9 = scmp.lt.s32.totalorder %s548_s26, %s548_s26  ;;  %p734_p10 = scmp.lt.s32.totalorder %s732_s10, %s726_s9 }
 0x431   : > { %p728_p7 = pnand %p727_p6, %p692_p5 }
 0x432   : > { %p735_p11 = por %p734_p10, %p733_p9 }
 0x433   : > { %p729_p8 = pneg %p728_p7 }
 0x435   : > { %p736_p12 = pnand %p735_p11, %p729_p8 }
 0x437   : > { %739 = shalt.err (!%p736_p12)
}
 0x438   : > { %685 = dma.vmem_to_hbm [thread:$0]  (%p692_p5), %s548_s26, 16, %s935_s7, [#allocation4]  }
 0x439   : > { %s750_s13 = scalar_lea.vmem %s559_s30, 32  ;;  %p757_p2 = scmp.lt.s32.totalorder %s559_s30, %s559_s30 }
 0x43a   : > { %p751_p13 = scmp.ne.s32.totalorder %s559_s30, %s750_s13  ;;  %p758_p3 = scmp.lt.s32.totalorder %s750_s13, %s750_s13 }
 0x43c   : > { %p752_p0 = pnand %p751_p13, %p692_p5  ;;  %p759_p4 = por %p758_p3, %p757_p2 }
 0x43e   : > { %p753_p1 = pneg %p752_p0 }
 0x440   : > { %p760_p6 = pnand %p759_p4, %p753_p1 }
 0x442   : > { %763 = shalt.err (!%p760_p6)
}
 0x443   : > { %687 = dma.vmem_to_hbm [thread:$0]  (%p692_p5), %s559_s30, 32, %s936_s8, [#allocation6]  }
 0x444   : > { %779 = dma.done.wait (%p692_p5), [#allocation4], 16  }
 0x445   : > { %781 = vsyncadd (%p692_p5), [#allocation4], 4294967280 }
 0x446   : > { %783 = dma.done.wait (%p692_p5), [#allocation6], 32  }
 0x447   : > { %785 = vsyncadd (%p692_p5), [#allocation6], 4294967264 }
 0x448 PF: > { %s21_s27 = sadd.s32 1, %s788_s27  }
 0x449   : > { %p18_p7 = scmp.ge.s32.totalorder %s21_s27, 4  }
 0x44b   :  { %20 = sbr.rel (!%p18_p7) target bundleno = 2 (0x2), region = 88 }
 0x450   :  { %575 = vsyncpa [#allocation4], 1 }
 0x451   :  { %577 = vsyncpa [#allocation4 + $0x1], 1 }
 0x452   :  { %578 = vsyncpa [#allocation6], 1 }

// kernel: scibert_forward.16
= control target key start
LH: loop header
LB: loop body
LE: loop exit
PB: predicated region body
PF: predicated region fallthrough
CT: control target
= control target key end

     0   :  { %v298_v1 = vmov 0   ;;  %v191_v18 = vlaneseq  ;;  %s379_s1 = inlined_call_operand.vmem [shape: bf16[128,256], index: 1, kind: input, shape index: {}]   ;;  %s380_s0 = inlined_call_operand.vmem [shape: bf16[16,128], index: 0, kind: input, shape index: {}]   ;;  %s381_s2 = inlined_call_operand.vmem [shape: f32[1,256], index: 2, kind: input, shape index: {}]   ;;  %s382_s3 = inlined_call_operand.vmem [shape: bf16[16,256], index: 3, kind: output, shape index: {}]  }
   0x1   :  { %v265_v0 = vld [vmem:[%s379_s1 + $0x74] ss:$8 sps:$4 sm:$0xff]   ;;  %163 = vmatprep.mubr.bf16.mxu0 %v298_v1  ;;  %v267_v2 = vld [vmem:[%s379_s1 + $0x70] ss:$8 sps:$4 sm:$0xff]   ;;  %v268_v3 = vld [vmem:[%s379_s1 + $0x64] ss:$8 sps:$4 sm:$0xff]  }
   0x2   :  { %131 = vmatprep.subr.bf16.mxu0 %v265_v0  ;;  %v270_v4 = vld [vmem:[%s379_s1 + $0x60] ss:$8 sps:$4 sm:$0xff]   ;;  %v271_v5 = vld [vmem:[%s379_s1 + $0x54] ss:$8 sps:$4 sm:$0xff]   ;;  %v273_v6 = vld [vmem:[%s379_s1 + $0x50] ss:$8 sps:$4 sm:$0xff]  }
   0x3   :  { %132 = vmatpush1.bf16.msra.mxu0 %v267_v2  ;;  %v274_v7 = vld [vmem:[%s379_s1 + $0x44] ss:$8 sps:$4 sm:$0xff]   ;;  %v276_v8 = vld [vmem:[%s379_s1 + $0x40] ss:$8 sps:$4 sm:$0xff]   ;;  %v277_v9 = vld [vmem:[%s379_s1 + $0x34] ss:$8 sps:$4 sm:$0xff]  }
   0x4   :  { %133 = vmatprep.subr.bf16.mxu0 %v268_v3  ;;  %v279_v10 = vld [vmem:[%s379_s1 + $0x30] ss:$8 sps:$4 sm:$0xff]   ;;  %v280_v11 = vld [vmem:[%s379_s1 + $0x24] ss:$8 sps:$4 sm:$0xff]   ;;  %v282_v12 = vld [vmem:[%s379_s1 + $0x20] ss:$8 sps:$4 sm:$0xff]  }
   0x5   :  { %v283_v13 = vld [vmem:[%s379_s1 + $0x14] ss:$8 sps:$4 sm:$0xff]   ;;  %v285_v14 = vld [vmem:[%s379_s1 + $0x10] ss:$8 sps:$4 sm:$0xff]   ;;  %v286_v15 = vld [vmem:[%s379_s1 + $0x4] ss:$8 sps:$4 sm:$0xff]  }
   0x6   :  { %v288_v16 = vld [vmem:[%s379_s1] ss:$8 sps:$4 sm:$0xff]   ;;  %v192_v19 = vshrl.u32 %v191_v18, 7 }
   0x7   :  { %134 = vmatpush1.bf16.msra.mxu0 %v270_v4  ;;  %v289_v17 = vld [vmem:[%s380_s0] sm:$0xff]  }
   0x8   :  { %135 = vmatprep.subr.bf16.mxu0 %v271_v5  ;;  %v193_v20 = vsub.s32 0, %v192_v19  ;;  %v189_v21 = vld [vmem:[%s381_s2] sm:$0x3]  ;;  %v197_v22 = vsub.s32 1, %v192_v19 }
   0xa   :  { %v194_v23 = vrot.slane %v189_v21, %v193_v20  ;;  %v198_v24 = vrot.slane %v189_v21, %v197_v22 }
   0xb   :  { %136 = vmatpush1.bf16.msra.mxu0 %v273_v6 }
   0xc   :  { %137 = vmatprep.subr.bf16.mxu0 %v274_v7 }
   0xf   :  { %138 = vmatpush1.bf16.msra.mxu0 %v276_v8 }
  0x10   :  { %139 = vmatprep.subr.bf16.mxu0 %v277_v9 }
  0x13   :  { %140 = vmatpush1.bf16.msra.mxu0 %v279_v10 }
  0x14   :  { %141 = vmatprep.subr.bf16.mxu0 %v280_v11 }
  0x17   :  { %142 = vmatpush1.bf16.msra.mxu0 %v282_v12 }
  0x18   :  { %143 = vmatprep.subr.bf16.mxu0 %v283_v13 }
  0x1b   :  { %144 = vmatpush1.bf16.msra.mxu0 %v285_v14 }
  0x1c   :  { %145 = vmatprep.subr.bf16.mxu0 %v286_v15 }
  0x1f   :  { %146 = vmatpush1.bf16.msra.mxu0 %v288_v16 }
  0x22   :  { %164 = vmatmul.mubr.bf16.vlgmr.msra.gmra.mxu0 %v289_v17 }
  0xe2   :  { %v165_v25 = vpop.f32.mrf.mxu0 }
  0xe3   :  { %v201_v26 = vadd.f32 %v194_v23, %v165_v25 }
  0xe4   :  { %v167_v27 = vpop.f32.mrf.mxu0 }
  0xe5   :  { %v209_v28 = vmul.f32 0.70710677, %v201_v26  ;;  %v202_v29 = vadd.f32 %v198_v24, %v167_v27  ;;  %v205_v40 = vmul.f32 0.5, %v201_v26 }
  0xe6   :  { %v169_v30 = vpop.f32.mrf.mxu0 }
  0xe7   :  { %290 = verf.f32 %v209_v28  ;;  %v210_v31 = vmul.f32 0.70710677, %v202_v29  ;;  %v203_v32 = vadd.f32 %v194_v23, %v169_v30  ;;  %v206_v41 = vmul.f32 0.5, %v202_v29 }
  0xe8   :  { %v171_v33 = vpop.f32.mrf.mxu0 }
  0xe9   :  { %292 = verf.f32 %v210_v31  ;;  %v211_v34 = vmul.f32 0.70710677, %v203_v32  ;;  %v204_v35 = vadd.f32 %v198_v24, %v171_v33  ;;  %v207_v49 = vmul.f32 0.5, %v203_v32 }
  0xeb   :  { %294 = verf.f32 %v211_v34  ;;  %v212_v36 = vmul.f32 0.70710677, %v204_v35  ;;  %v208_v50 = vmul.f32 0.5, %v204_v35 }
  0xed   :  { %296 = verf.f32 %v212_v36 }
  0xf4   :  { %v291_v37 = vpop.eup %290 }
  0xf5   :  { %v217_v38 = vadd.f32 1.0, %v291_v37 }
  0xf6   :  { %v293_v39 = vpop.eup %292 }
  0xf7   :  { %v218_v42 = vadd.f32 1.0, %v293_v39  ;;  %v221_v44 = vmul.f32 %v217_v38, %v205_v40 }
  0xf8   :  { %v295_v43 = vpop.eup %294 }
  0xf9   :  { %v222_v45 = vmul.f32 %v218_v42, %v206_v41  ;;  %v219_v46 = vadd.f32 1.0, %v295_v43 }
  0xfa   :  { %v297_v47 = vpop.eup %296 }
  0xfb   :  { %v262_v48 = vpack.c.bf16 %v222_v45, %v221_v44  ;;  %v220_v51 = vadd.f32 1.0, %v297_v47  ;;  %v223_v52 = vmul.f32 %v219_v46, %v207_v49 }
  0xfd   :  { %237 = vst [vmem:[%s382_s3] sm:$0xff] %v262_v48  ;;  %v224_v53 = vmul.f32 %v220_v51, %v208_v50 }
  0xff   :  { %v263_v54 = vpack.c.bf16 %v224_v53, %v223_v52 }
 0x101   :  { %238 = vst [vmem:[%s382_s3 + $0x8] sm:$0xff] %v263_v54 }

</bundles_post_ra>
